<compile_context>
chip_gen: v5e
topology: v5e:2x2
jax: 0.10.0
libtpu: 0.0.40
codegen_flags: <defaults>
</compile_context>

<pallas_src>
import numpy as np
import jax
import jax.numpy as jnp
from jax import lax
from jax.experimental import pallas as pl
from jax.experimental.pallas import tpu as pltpu

LN_EPS = 1e-5


# ----------------------------- fused Pallas kernel -------------------------- #
def _fused_slae_kernel(a_ref, g_ref, be_ref,
                       m1_ref, b1_ref, m2_ref, b2_ref,
                       m3_ref, b3_ref, m4_ref, b4_ref, o_ref):
    # a_ref: (1, 128, 196)  per-image activation in block layout (rows=(c,dh,dw), cols=(bh,bw))
    x = a_ref[0]                                       # (128, 196) f32

    # LayerNorm over all C*H*W elements (single-pass biased variance, like torch).
    inv_n = 1.0 / (x.shape[0] * x.shape[1])
    mean = jnp.sum(x) * inv_n
    ex2 = jnp.sum(x * x) * inv_n
    var = ex2 - mean * mean
    inv = lax.rsqrt(var + LN_EPS)
    h0 = (x - mean) * inv * g_ref[...] + be_ref[...]   # (128, 196)

    def mm_bias(m_ref, h, b_ref):
        # (Fout, Fin) @ (Fin, P) + (Fout, 1)  -- pixels stay on lanes.
        return jnp.dot(m_ref[...], h, preferred_element_type=jnp.float32) + b_ref[...]

    def silu(v):
        return v * jax.nn.sigmoid(v)

    h1 = silu(mm_bias(m1_ref, h0, b1_ref))             # conv1 (8->4) + SiLU   -> (16, 196)
    h2 = silu(mm_bias(m2_ref, h1, b2_ref))             # conv2 (4->16) + SiLU  -> (16, 196)
    h3 = silu(mm_bias(m3_ref, h2, b3_ref))             # convT1 (16->4) + SiLU -> (16, 196)
    o_ref[0] = mm_bias(m4_ref, h3, b4_ref)             # convT2 (4->8)         -> (128, 196)


# ----------------------------- JAX-side layout glue -------------------------- #
def to_block_layout(x):
    # (N, C, H, W) -> (N, C*16, (H//4)*(W//4)); row=(c,dh,dw), col=(bh,bw), h=4*bh+dh.
    N, C, H, W = x.shape
    v = x.reshape(N, C, H // 4, 4, W // 4, 4)          # (N, c, bh, dh, bw, dw)
    v = v.transpose(0, 1, 3, 5, 2, 4)                  # (N, c, dh, dw, bh, bw)
    return v.reshape(N, C * 16, (H // 4) * (W // 4))


def from_block_layout(y, C, H, W):
    N = y.shape[0]
    v = y.reshape(N, C, 4, 4, H // 4, W // 4)          # (N, c, dh, dw, bh, bw)
    v = v.transpose(0, 1, 4, 2, 5, 3)                  # (N, c, bh, dh, bw, dw)
    return v.reshape(N, C, H, W)


def _fold_weights(params):
    """Fold the four conv/convT weights into block-local (Fout, Fin) matrices."""
    f32 = jnp.float32
    # conv1: Conv2d(8->4,k=2,s=2) acting inside a 4x4 block -> M1 (16, 128)
    w1 = params["conv1_w"].astype(f32)                 # (c1=4, c=8, kh=2, kw=2)
    m1 = jnp.zeros((4, 2, 2, 8, 4, 4), f32)            # (c1, ph, pw, c, dh, dw)
    for ph in range(2):
        for pw in range(2):
            m1 = m1.at[:, ph, pw, :, 2 * ph:2 * ph + 2, 2 * pw:2 * pw + 2].set(w1)
    m1 = m1.reshape(16, 128)
    bias1 = jnp.repeat(params["conv1_b"].astype(f32), 4).reshape(16, 1)

    # conv2: Conv2d(4->16,k=2,s=2) on the 2x2 sub-grid -> M2 (16, 16)
    m2 = params["conv2_w"].astype(f32).reshape(16, 16)         # rows=c2, cols=(c1,kh,kw)
    bias2 = params["conv2_b"].astype(f32).reshape(16, 1)

    # convT1: ConvTranspose2d(16->4,k=2,s=2) -> M3 (16, 16), rows=(c3,ph,pw), cols=c2
    w3 = params["convt1_w"].astype(f32)                        # (c2=16, c3=4, kh, kw)
    m3 = jnp.transpose(w3, (1, 2, 3, 0)).reshape(16, 16)
    bias3 = jnp.repeat(params["convt1_b"].astype(f32), 4).reshape(16, 1)

    # convT2: ConvTranspose2d(4->8,k=2,s=2) -> M4 (128, 16), rows=(c4,dh,dw), cols=(c3,ph,pw)
    w4 = params["convt2_w"].astype(f32)                        # (c3=4, c4=8, kh, kw)
    w4t = jnp.transpose(w4, (1, 2, 3, 0))                      # (c4, kh, kw, c3)
    m4 = jnp.zeros((8, 4, 4, 4, 2, 2), f32)                    # (c4, dh, dw, c3, ph, pw)
    for ph in range(2):
        for pw in range(2):
            m4 = m4.at[:, 2 * ph:2 * ph + 2, 2 * pw:2 * pw + 2, :, ph, pw].set(w4t)
    m4 = m4.reshape(128, 16)
    bias4 = jnp.repeat(params["convt2_b"].astype(f32), 16).reshape(128, 1)

    return m1, bias1, m2, bias2, m3, bias3, m4, bias4


@jax.jit
def style_autoencoder_forward(x, params):
    """Eval forward of StyleLearningAutoEncoder('diamond') == ae1.forward_pass(x)."""
    N, C, H, W = x.shape
    F = C * 16                                         # 128
    P = (H // 4) * (W // 4)                            # 196

    a = to_block_layout(x)                             # (N, 128, 196)
    g = to_block_layout(params["ln_gamma"][None])[0]   # (128, 196)
    be = to_block_layout(params["ln_beta"][None])[0]   # (128, 196)
    m1, b1, m2, b2, m3, b3, m4, b4 = _fold_weights(params)

    const = lambda shape: pl.BlockSpec(shape, lambda n: tuple(0 for _ in shape))
    out = pl.pallas_call(
        _fused_slae_kernel,
        out_shape=jax.ShapeDtypeStruct((N, F, P), jnp.float32),
        grid_spec=pltpu.PrefetchScalarGridSpec(
            num_scalar_prefetch=0,
            grid=(N,),
            in_specs=[
                pl.BlockSpec((1, F, P), lambda n: (n, 0, 0)),   # activation (per image)
                const((F, P)),                                  # gamma (block layout)
                const((F, P)),                                  # beta  (block layout)
                const((16, F)), const((16, 1)),                 # conv1
                const((16, 16)), const((16, 1)),                # conv2
                const((16, 16)), const((16, 1)),                # convT1
                const((F, 16)), const((F, 1)),                  # convT2
            ],
            out_specs=pl.BlockSpec((1, F, P), lambda n: (n, 0, 0)),
        ),
        compiler_params=pltpu.CompilerParams(dimension_semantics=("parallel",)),
    )(a, g, be, m1, b1, m2, b2, m3, b3, m4, b4)

    return from_block_layout(out, C, H, W)             # (N, 8, 56, 56)


# ----------------------------- pure-JAX reference --------------------------- #
def reference_forward(x, params):
    mean = x.mean(axis=(1, 2, 3), keepdims=True)
    var = ((x - mean) ** 2).mean(axis=(1, 2, 3), keepdims=True)
    xn = (x - mean) / jnp.sqrt(var + LN_EPS) * params["ln_gamma"][None] + params["ln_beta"][None]

    def conv(v, w, b):
        y = lax.conv_general_dilated(v, w, (2, 2), "VALID",
                                     dimension_numbers=("NCHW", "OIHW", "NCHW"))
        return y + b[None, :, None, None]

    def convt(v, w, b):  # k == s == 2 -> non-overlapping transposed conv
        y = jnp.einsum("ncij,cokl->noikjl", v, w)
        n, o, ih, kh, iw, kw = y.shape
        return y.reshape(n, o, ih * kh, iw * kw) + b[None, :, None, None]

    silu = lambda v: v * jax.nn.sigmoid(v)
    h = silu(conv(xn, params["conv1_w"], params["conv1_b"]))
    h = silu(conv(h, params["conv2_w"], params["conv2_b"]))
    h = silu(convt(h, params["convt1_w"], params["convt1_b"]))
    return convt(h, params["convt2_w"], params["convt2_b"])


if __name__ == "__main__":
    key = jax.random.PRNGKey(0)
    ks = jax.random.split(key, 12)

    # LayerNorm([8,56,56]) inside DiamondStyleLearningCell pins C=8, H=W=56.
    # layernumberList = [8, 16, 16, 16] -> input_size=8, output_size=16, output_size//4=4
    N, C, H, W = 2, 8, 56, 56
    Cout, Cmid = 16, 4

    params = {
        "ln_gamma": 1.0 + 0.05 * jax.random.normal(ks[0], (C, H, W), jnp.float32),
        "ln_beta":  0.05 * jax.random.normal(ks[1], (C, H, W), jnp.float32),
        "conv1_w":  0.2 * jax.random.normal(ks[2], (Cmid, C, 2, 2), jnp.float32),
        "conv1_b":  0.05 * jax.random.normal(ks[3], (Cmid,), jnp.float32),
        "conv2_w":  0.2 * jax.random.normal(ks[4], (Cout, Cmid, 2, 2), jnp.float32),
        "conv2_b":  0.05 * jax.random.normal(ks[5], (Cout,), jnp.float32),
        "convt1_w": 0.2 * jax.random.normal(ks[6], (Cout, Cmid, 2, 2), jnp.float32),
        "convt1_b": 0.05 * jax.random.normal(ks[7], (Cmid,), jnp.float32),
        "convt2_w": 0.2 * jax.random.normal(ks[8], (Cmid, C, 2, 2), jnp.float32),
        "convt2_b": 0.05 * jax.random.normal(ks[9], (C,), jnp.float32),
    }

    x = jax.random.normal(ks[10], (N, C, H, W), jnp.float32)
    # l1 / l2 / l3 / loss_ are only consumed by the in-forward training branch
    # (Gram_loss + SGD step) of DiamondStyleLearningCell; eval output is forward_pass(x).
    # TODO(synk): training-mode branch (Gram_loss, loss.backward(), optimizer.step())
    # has no Pallas equivalent; only the eval forward path is implemented.

    out = jax.block_until_ready(style_autoencoder_forward(x, params))
    ref = jax.block_until_ready(reference_forward(x, params))
    np.testing.assert_allclose(np.asarray(out), np.asarray(ref), rtol=1e-3, atol=1e-3)
    assert out.shape == (N, C, H, W) and out.dtype == jnp.float32
    print("KERNEL_OK")
</pallas_src>

<mosaic_0001>
module attributes {stable_mosaic.version = 11 : i64} {
  func.func @_fused_slae_kernel(%arg0: i32, %arg1: memref<1x128x196xf32, #tpu.memory_space<vmem>>, %arg2: memref<128x196xf32, #tpu.memory_space<vmem>>, %arg3: memref<128x196xf32, #tpu.memory_space<vmem>>, %arg4: memref<16x128xf32, #tpu.memory_space<vmem>>, %arg5: memref<16x1xf32, #tpu.memory_space<vmem>>, %arg6: memref<16x16xf32, #tpu.memory_space<vmem>>, %arg7: memref<16x1xf32, #tpu.memory_space<vmem>>, %arg8: memref<16x16xf32, #tpu.memory_space<vmem>>, %arg9: memref<16x1xf32, #tpu.memory_space<vmem>>, %arg10: memref<128x16xf32, #tpu.memory_space<vmem>>, %arg11: memref<128x1xf32, #tpu.memory_space<vmem>>, %arg12: memref<1x128x196xf32, #tpu.memory_space<vmem>>) attributes {dimension_semantics = [#tpu.dimension_semantics<parallel>], iteration_bounds = array<i64: 2>, scalar_prefetch = 0 : i64, scratch_operands = 0 : i64, tpu.core_type = #tpu.core_type<tc>, window_params = [{transform_indices = @transform_0, window_bounds = array<i64: 1, 128, 196>}, {pipeline_mode = #tpu.pipeline_mode<synchronous>, transform_indices = @transform_1, window_bounds = array<i64: 128, 196>}, {pipeline_mode = #tpu.pipeline_mode<synchronous>, transform_indices = @transform_2, window_bounds = array<i64: 128, 196>}, {pipeline_mode = #tpu.pipeline_mode<synchronous>, transform_indices = @transform_3, window_bounds = array<i64: 16, 128>}, {pipeline_mode = #tpu.pipeline_mode<synchronous>, transform_indices = @transform_4, window_bounds = array<i64: 16, 1>}, {pipeline_mode = #tpu.pipeline_mode<synchronous>, transform_indices = @transform_5, window_bounds = array<i64: 16, 16>}, {pipeline_mode = #tpu.pipeline_mode<synchronous>, transform_indices = @transform_6, window_bounds = array<i64: 16, 1>}, {pipeline_mode = #tpu.pipeline_mode<synchronous>, transform_indices = @transform_7, window_bounds = array<i64: 16, 16>}, {pipeline_mode = #tpu.pipeline_mode<synchronous>, transform_indices = @transform_8, window_bounds = array<i64: 16, 1>}, {pipeline_mode = #tpu.pipeline_mode<synchronous>, transform_indices = @transform_9, window_bounds = array<i64: 128, 16>}, {pipeline_mode = #tpu.pipeline_mode<synchronous>, transform_indices = @transform_10, window_bounds = array<i64: 128, 1>}, {transform_indices = @transform_11, window_bounds = array<i64: 1, 128, 196>}]} {
    %c0 = arith.constant 0 : index
    %c0_0 = arith.constant 0 : index
    %c0_1 = arith.constant 0 : index
    %0 = vector.load %arg1[%c0, %c0_0, %c0_1] : memref<1x128x196xf32, #tpu.memory_space<vmem>>, vector<1x128x196xf32>
    %1 = vector.shape_cast %0 : vector<1x128x196xf32> to vector<128x196xf32>
    %2 = vector.shape_cast %1 : vector<128x196xf32> to vector<1x128x196xf32>
    %cst = arith.constant dense<0.000000e+00> : vector<1xf32>
    %3 = vector.multi_reduction <add>, %2, %cst [1, 2] : vector<1x128x196xf32> to vector<1xf32>
    %4 = vector.shape_cast %3 : vector<1xf32> to vector<1x1x1xf32>
    %5 = vector.extract %4[0, 0, 0] : f32 from vector<1x1x1xf32>
    %cst_2 = arith.constant 3.98596931E-5 : f32
    %6 = arith.mulf %5, %cst_2 : f32
    %7 = arith.mulf %1, %1 : vector<128x196xf32>
    %8 = vector.shape_cast %7 : vector<128x196xf32> to vector<1x128x196xf32>
    %cst_3 = arith.constant dense<0.000000e+00> : vector<1xf32>
    %9 = vector.multi_reduction <add>, %8, %cst_3 [1, 2] : vector<1x128x196xf32> to vector<1xf32>
    %10 = vector.shape_cast %9 : vector<1xf32> to vector<1x1x1xf32>
    %11 = vector.extract %10[0, 0, 0] : f32 from vector<1x1x1xf32>
    %cst_4 = arith.constant 3.98596931E-5 : f32
    %12 = arith.mulf %11, %cst_4 : f32
    %13 = arith.mulf %6, %6 : f32
    %14 = arith.subf %12, %13 : f32
    %cst_5 = arith.constant 9.99999974E-6 : f32
    %15 = arith.addf %14, %cst_5 : f32
    %16 = math.rsqrt %15 : f32
    %17 = vector.broadcast %6 : f32 to vector<128x196xf32>
    %18 = arith.subf %1, %17 : vector<128x196xf32>
    %19 = vector.broadcast %16 : f32 to vector<128x196xf32>
    %20 = arith.mulf %18, %19 : vector<128x196xf32>
    %c0_6 = arith.constant 0 : index
    %c0_7 = arith.constant 0 : index
    %21 = vector.load %arg2[%c0_6, %c0_7] : memref<128x196xf32, #tpu.memory_space<vmem>>, vector<128x196xf32>
    %22 = arith.mulf %20, %21 : vector<128x196xf32>
    %c0_8 = arith.constant 0 : index
    %c0_9 = arith.constant 0 : index
    %23 = vector.load %arg3[%c0_8, %c0_9] : memref<128x196xf32, #tpu.memory_space<vmem>>, vector<128x196xf32>
    %24 = arith.addf %22, %23 : vector<128x196xf32>
    %c0_10 = arith.constant 0 : index
    %c0_11 = arith.constant 0 : index
    %25 = vector.load %arg4[%c0_10, %c0_11] : memref<16x128xf32, #tpu.memory_space<vmem>>, vector<16x128xf32>
    %cst_12 = arith.constant dense<0.000000e+00> : vector<16x196xf32>
    %26 = tpu.matmul %25, %24, %cst_12 {dimension_numbers = #tpu.dot_dimension_numbers<[1], [0], [0], [1], [0, 0, 1, 1], [], []>} : vector<16x128xf32>, vector<128x196xf32>, vector<16x196xf32> -> vector<16x196xf32>
    %c0_13 = arith.constant 0 : index
    %c0_14 = arith.constant 0 : index
    %27 = vector.load %arg5[%c0_13, %c0_14] : memref<16x1xf32, #tpu.memory_space<vmem>>, vector<16x1xf32>
    %28 = vector.broadcast %27 : vector<16x1xf32> to vector<16x196xf32>
    %29 = arith.addf %26, %28 : vector<16x196xf32>
    %30 = arith.negf %29 : vector<16x196xf32>
    %31 = math.exp %30 : vector<16x196xf32>
    %cst_15 = arith.constant 1.000000e+00 : f32
    %32 = vector.broadcast %cst_15 : f32 to vector<16x196xf32>
    %33 = arith.addf %32, %31 : vector<16x196xf32>
    %34 = arith.divf %32, %33 : vector<16x196xf32>
    %35 = arith.mulf %29, %34 : vector<16x196xf32>
    %c0_16 = arith.constant 0 : index
    %c0_17 = arith.constant 0 : index
    %36 = vector.load %arg6[%c0_16, %c0_17] : memref<16x16xf32, #tpu.memory_space<vmem>>, vector<16x16xf32>
    %cst_18 = arith.constant dense<0.000000e+00> : vector<16x196xf32>
    %37 = tpu.matmul %36, %35, %cst_18 {dimension_numbers = #tpu.dot_dimension_numbers<[1], [0], [0], [1], [0, 0, 1, 1], [], []>} : vector<16x16xf32>, vector<16x196xf32>, vector<16x196xf32> -> vector<16x196xf32>
    %c0_19 = arith.constant 0 : index
    %c0_20 = arith.constant 0 : index
    %38 = vector.load %arg7[%c0_19, %c0_20] : memref<16x1xf32, #tpu.memory_space<vmem>>, vector<16x1xf32>
    %39 = vector.broadcast %38 : vector<16x1xf32> to vector<16x196xf32>
    %40 = arith.addf %37, %39 : vector<16x196xf32>
    %41 = arith.negf %40 : vector<16x196xf32>
    %42 = math.exp %41 : vector<16x196xf32>
    %cst_21 = arith.constant 1.000000e+00 : f32
    %43 = vector.broadcast %cst_21 : f32 to vector<16x196xf32>
    %44 = arith.addf %43, %42 : vector<16x196xf32>
    %45 = arith.divf %43, %44 : vector<16x196xf32>
    %46 = arith.mulf %40, %45 : vector<16x196xf32>
    %c0_22 = arith.constant 0 : index
    %c0_23 = arith.constant 0 : index
    %47 = vector.load %arg8[%c0_22, %c0_23] : memref<16x16xf32, #tpu.memory_space<vmem>>, vector<16x16xf32>
    %cst_24 = arith.constant dense<0.000000e+00> : vector<16x196xf32>
    %48 = tpu.matmul %47, %46, %cst_24 {dimension_numbers = #tpu.dot_dimension_numbers<[1], [0], [0], [1], [0, 0, 1, 1], [], []>} : vector<16x16xf32>, vector<16x196xf32>, vector<16x196xf32> -> vector<16x196xf32>
    %c0_25 = arith.constant 0 : index
    %c0_26 = arith.constant 0 : index
    %49 = vector.load %arg9[%c0_25, %c0_26] : memref<16x1xf32, #tpu.memory_space<vmem>>, vector<16x1xf32>
    %50 = vector.broadcast %49 : vector<16x1xf32> to vector<16x196xf32>
    %51 = arith.addf %48, %50 : vector<16x196xf32>
    %52 = arith.negf %51 : vector<16x196xf32>
    %53 = math.exp %52 : vector<16x196xf32>
    %cst_27 = arith.constant 1.000000e+00 : f32
    %54 = vector.broadcast %cst_27 : f32 to vector<16x196xf32>
    %55 = arith.addf %54, %53 : vector<16x196xf32>
    %56 = arith.divf %54, %55 : vector<16x196xf32>
    %57 = arith.mulf %51, %56 : vector<16x196xf32>
    %c0_28 = arith.constant 0 : index
    %c0_29 = arith.constant 0 : index
    %58 = vector.load %arg10[%c0_28, %c0_29] : memref<128x16xf32, #tpu.memory_space<vmem>>, vector<128x16xf32>
    %cst_30 = arith.constant dense<0.000000e+00> : vector<128x196xf32>
    %59 = tpu.matmul %58, %57, %cst_30 {dimension_numbers = #tpu.dot_dimension_numbers<[1], [0], [0], [1], [0, 0, 1, 1], [], []>} : vector<128x16xf32>, vector<16x196xf32>, vector<128x196xf32> -> vector<128x196xf32>
    %c0_31 = arith.constant 0 : index
    %c0_32 = arith.constant 0 : index
    %60 = vector.load %arg11[%c0_31, %c0_32] : memref<128x1xf32, #tpu.memory_space<vmem>>, vector<128x1xf32>
    %61 = vector.broadcast %60 : vector<128x1xf32> to vector<128x196xf32>
    %62 = arith.addf %59, %61 : vector<128x196xf32>
    %c0_33 = arith.constant 0 : index
    %c0_34 = arith.constant 0 : index
    %c0_35 = arith.constant 0 : index
    %63 = vector.load %arg12[%c0_33, %c0_34, %c0_35] : memref<1x128x196xf32, #tpu.memory_space<vmem>>, vector<1x128x196xf32>
    %64 = vector.shape_cast %63 : vector<1x128x196xf32> to vector<128x196xf32>
    %65 = vector.shape_cast %62 : vector<128x196xf32> to vector<1x128x196xf32>
    tpu.vector_store %arg12[%c0_33, %c0_34, %c0_35], %65 {strides = array<i32>} : memref<1x128x196xf32, #tpu.memory_space<vmem>>, vector<1x128x196xf32>,
    return
  }
  func.func @transform_0(%arg0: i32) -> (i32, i32, i32) {
    %c0_i32 = arith.constant 0 : i32
    %c0_i32_0 = arith.constant 0 : i32
    %c0_i32_1 = arith.constant 0 : i32
    return %arg0, %c0_i32, %c0_i32_0 : i32, i32, i32
  }
  func.func @transform_1(%arg0: i32) -> (i32, i32) {
    %c0_i32 = arith.constant 0 : i32
    %c0_i32_0 = arith.constant 0 : i32
    %c0_i32_1 = arith.constant 0 : i32
    return %c0_i32, %c0_i32_0 : i32, i32
  }
  func.func @transform_2(%arg0: i32) -> (i32, i32) {
    %c0_i32 = arith.constant 0 : i32
    %c0_i32_0 = arith.constant 0 : i32
    %c0_i32_1 = arith.constant 0 : i32
    return %c0_i32, %c0_i32_0 : i32, i32
  }
  func.func @transform_3(%arg0: i32) -> (i32, i32) {
    %c0_i32 = arith.constant 0 : i32
    %c0_i32_0 = arith.constant 0 : i32
    %c0_i32_1 = arith.constant 0 : i32
    return %c0_i32, %c0_i32_0 : i32, i32
  }
  func.func @transform_4(%arg0: i32) -> (i32, i32) {
    %c0_i32 = arith.constant 0 : i32
    %c0_i32_0 = arith.constant 0 : i32
    %c0_i32_1 = arith.constant 0 : i32
    return %c0_i32, %c0_i32_0 : i32, i32
  }
  func.func @transform_5(%arg0: i32) -> (i32, i32) {
    %c0_i32 = arith.constant 0 : i32
    %c0_i32_0 = arith.constant 0 : i32
    %c0_i32_1 = arith.constant 0 : i32
    return %c0_i32, %c0_i32_0 : i32, i32
  }
  func.func @transform_6(%arg0: i32) -> (i32, i32) {
    %c0_i32 = arith.constant 0 : i32
    %c0_i32_0 = arith.constant 0 : i32
    %c0_i32_1 = arith.constant 0 : i32
    return %c0_i32, %c0_i32_0 : i32, i32
  }
  func.func @transform_7(%arg0: i32) -> (i32, i32) {
    %c0_i32 = arith.constant 0 : i32
    %c0_i32_0 = arith.constant 0 : i32
    %c0_i32_1 = arith.constant 0 : i32
    return %c0_i32, %c0_i32_0 : i32, i32
  }
  func.func @transform_8(%arg0: i32) -> (i32, i32) {
    %c0_i32 = arith.constant 0 : i32
    %c0_i32_0 = arith.constant 0 : i32
    %c0_i32_1 = arith.constant 0 : i32
    return %c0_i32, %c0_i32_0 : i32, i32
  }
  func.func @transform_9(%arg0: i32) -> (i32, i32) {
    %c0_i32 = arith.constant 0 : i32
    %c0_i32_0 = arith.constant 0 : i32
    %c0_i32_1 = arith.constant 0 : i32
    return %c0_i32, %c0_i32_0 : i32, i32
  }
  func.func @transform_10(%arg0: i32) -> (i32, i32) {
    %c0_i32 = arith.constant 0 : i32
    %c0_i32_0 = arith.constant 0 : i32
    %c0_i32_1 = arith.constant 0 : i32
    return %c0_i32, %c0_i32_0 : i32, i32
  }
  func.func @transform_11(%arg0: i32) -> (i32, i32, i32) {
    %c0_i32 = arith.constant 0 : i32
    %c0_i32_0 = arith.constant 0 : i32
    %c0_i32_1 = arith.constant 0 : i32
    return %arg0, %c0_i32, %c0_i32_0 : i32, i32, i32
  }
}

</mosaic_0001>

<bundles_post_ra>
// kernel: style_autoencoder_forward.1
= control target key start
LH: loop header
LB: loop body
LE: loop exit
PB: predicated region body
PF: predicated region fallthrough
CT: control target
= control target key end

     0   :  { %s1791_s17 = smov 0   ;;  %s2749_s0 = inlined_call_operand.vmem [shape: f32[2,128,196], index: 0, kind: input, shape index: {}]   ;;  %s2750_s1 = inlined_call_operand.vmem [shape: f32[128,196], index: 1, kind: input, shape index: {}]   ;;  %s2751_s2 = inlined_call_operand.vmem [shape: f32[128,196], index: 2, kind: input, shape index: {}]   ;;  %s2752_s3 = inlined_call_operand.vmem [shape: f32[16,128], index: 3, kind: input, shape index: {}]   ;;  %s2753_s4 = inlined_call_operand.vmem [shape: f32[16,1], index: 4, kind: input, shape index: {}]   ;;  %s2754_s5 = inlined_call_operand.vmem [shape: f32[16,16], index: 5, kind: input, shape index: {}]   ;;  %s2755_s6 = inlined_call_operand.vmem [shape: f32[16,1], index: 6, kind: input, shape index: {}]   ;;  %s2756_s7 = inlined_call_operand.vmem [shape: f32[16,16], index: 7, kind: input, shape index: {}]   ;;  %s2757_s8 = inlined_call_operand.vmem [shape: f32[16,1], index: 8, kind: input, shape index: {}]   ;;  %s2758_s9 = inlined_call_operand.vmem [shape: f32[128,16], index: 9, kind: input, shape index: {}]   ;;  %s2759_s10 = inlined_call_operand.vmem [shape: f32[128,1], index: 10, kind: input, shape index: {}]   ;;  %s2760_s11 = inlined_call_operand.vmem [shape: f32[2,128,196], index: 11, kind: output, shape index: {}]  }
   0x1 LB: > { %s1585_s18 = sadd.s32 4294967295, %s1728_s17   ;;  %p1589_p0 = scmp.ge.s32.totalorder %s1728_s17, 1  ;;  %s1728_s17 = sphi %s1791_s17, %s21_s17  }
   0x2   : > { %p337_p1 = scmp.lt.s32.totalorder %s1728_s17, 3 }
   0x4   : > { %p338_p2 = pnand %p1589_p0, %p337_p1 }
   0x5   : > { %p377_p3 = scmp.lt.s32.totalorder (!%p338_p2), %s1585_s18, 1 }
   0x6   : > { %341 = sbr.rel (%p338_p2) target bundleno = 1098 (0x44a), region = 64 }
   0xb   : > { %s2774_s18 = smov (!%p377_p3, %s1585_s18), 1  ;;  %vm419_vm0 = vcmask 556032  }
   0xc   : > { %s1648_s19 = sshll.u32 %s2774_s18, 8 }
   0xd   : > { %s1807_s22 = scalar_lea.vmem %s2749_s0, %s1648_s19  ;;  %s2690_s25 = scalar_lea.vmem %s2760_s11, %s1648_s19 }
   0xe   : > { %v1810_v0 = vld [vmem:[%s1807_s22] sm:$0xff]  ;;  %v1813_v1 = vld [vmem:[%s1807_s22 + $0x8] sm:$0xff]  ;;  %v1816_v2 = vld [vmem:[%s1807_s22 + $0x10] sm:$0xff] }
   0xf   : > { %v1819_v3 = vld [vmem:[%s1807_s22 + $0x18] sm:$0xff]  ;;  %v420_v4 = vsel %vm419_vm0, %v1813_v1, 0.0  ;;  %v1827_v7 = vld [vmem:[%s1807_s22 + $0x28] sm:$0xff]  ;;  %v1831_v9 = vld [vmem:[%s1807_s22 + $0x20] sm:$0xff]  ;;  %v478_v10 = vmul.f32 %v1813_v1, %v1813_v1  ;;  %v477_v12 = vmul.f32 %v1810_v0, %v1810_v0  ;;  %v479_v17 = vmul.f32 %v1816_v2, %v1816_v2 }
  0x10   : > { %v421_v5 = vadd.f32 %v420_v4, %v1810_v0  ;;  %v423_v6 = vsel %vm419_vm0, %v1819_v3, 0.0  ;;  %v426_v13 = vsel %vm419_vm0, %v1827_v7, 0.0  ;;  %v480_v14 = vmul.f32 %v1819_v3, %v1819_v3  ;;  %v1842_v15 = vld [vmem:[%s1807_s22 + $0x38] sm:$0xff]  ;;  %v1848_v18 = vld [vmem:[%s1807_s22 + $0x30] sm:$0xff]  ;;  %v1857_v25 = vld [vmem:[%s1807_s22 + $0x48] sm:$0xff] }
  0x11   : > { %v509_v19 = vsel %vm419_vm0, %v478_v10, 0.0  ;;  %v429_v22 = vsel %vm419_vm0, %v1842_v15, 0.0  ;;  %v482_v23 = vmul.f32 %v1827_v7, %v1827_v7  ;;  %v481_v27 = vmul.f32 %v1831_v9, %v1831_v9  ;;  %v1863_v29 = vld [vmem:[%s1807_s22 + $0x40] sm:$0xff]  ;;  %v1871_v35 = vld [vmem:[%s1807_s22 + $0x58] sm:$0xff]  ;;  %v1877_v39 = vld [vmem:[%s1807_s22 + $0x50] sm:$0xff] }
  0x12   : > { %v422_v8 = vadd.f32 %v421_v5, %v1816_v2  ;;  %v510_v21 = vadd.f32 %v509_v19, %v477_v12  ;;  %v512_v24 = vsel %vm419_vm0, %v480_v14, 0.0  ;;  %v432_v32 = vsel %vm419_vm0, %v1857_v25, 0.0  ;;  %v1885_v45 = vld [vmem:[%s1807_s22 + $0x68] sm:$0xff]  ;;  %v1891_v49 = vld [vmem:[%s1807_s22 + $0x60] sm:$0xff]  ;;  %v1899_v55 = vld [vmem:[%s1807_s22 + $0x78] sm:$0xff] }
  0x13   : > { %v484_v33 = vmul.f32 %v1842_v15, %v1842_v15  ;;  %v515_v34 = vsel %vm419_vm0, %v482_v23, 0.0  ;;  %v483_v37 = vmul.f32 %v1848_v18, %v1848_v18  ;;  %v435_v42 = vsel %vm419_vm0, %v1871_v35, 0.0  ;;  %v1905_v59 = vld [vmem:[%s1807_s22 + $0x70] sm:$0xff]  ;;  %v1913_v5 = vld [vmem:[%s1807_s22 + $0x88] sm:$0xff]  ;;  %v1927_v19 = vld [vmem:[%s1807_s22 + $0x98] sm:$0xff] }
  0x14   : > { %v424_v11 = vadd.f32 %v423_v6, %v422_v8  ;;  %v511_v28 = vadd.f32 %v510_v21, %v479_v17  ;;  %v486_v43 = vmul.f32 %v1857_v25, %v1857_v25  ;;  %v485_v47 = vmul.f32 %v1863_v29, %v1863_v29  ;;  %v1933_v23 = vld [vmem:[%s1807_s22 + $0x90] sm:$0xff] }
  0x15   : > { %v518_v44 = vsel %vm419_vm0, %v484_v33, 0.0  ;;  %v438_v52 = vsel %vm419_vm0, %v1885_v45, 0.0  ;;  %v488_v53 = vmul.f32 %v1871_v35, %v1871_v35  ;;  %v487_v57 = vmul.f32 %v1877_v39, %v1877_v39 }
  0x16   : > { %v425_v16 = vadd.f32 %v424_v11, %v1831_v9  ;;  %v513_v31 = vadd.f32 %v512_v24, %v511_v28  ;;  %v521_v54 = vsel %vm419_vm0, %v486_v43, 0.0  ;;  %v441_v62 = vsel %vm419_vm0, %v1899_v55, 0.0  ;;  %v1919_v11 = vld [vmem:[%s1807_s22 + $0x80] sm:$0xff]  ;;  %v1955_v43 = vld [vmem:[%s1807_s22 + $0xb8] sm:$0xff] }
  0x17   : > { %v490_v63 = vmul.f32 %v1885_v45, %v1885_v45  ;;  %v524_v4 = vsel %vm419_vm0, %v488_v53, 0.0  ;;  %v489_v8 = vmul.f32 %v1891_v49, %v1891_v49  ;;  %v444_v14 = vsel %vm419_vm0, %v1913_v5, 0.0 }
  0x18   : > { %v427_v20 = vadd.f32 %v426_v13, %v425_v16  ;;  %v514_v38 = vadd.f32 %v513_v31, %v481_v27  ;;  %v492_v16 = vmul.f32 %v1899_v55, %v1899_v55  ;;  %v491_v21 = vmul.f32 %v1905_v59, %v1905_v59  ;;  %v1941_v31 = vld [vmem:[%s1807_s22 + $0xa8] sm:$0xff] }
  0x19   : > { %v527_v17 = vsel %vm419_vm0, %v490_v63, 0.0  ;;  %v447_v27 = vsel %vm419_vm0, %v1927_v19, 0.0  ;;  %v494_v28 = vmul.f32 %v1913_v5, %v1913_v5  ;;  %v493_v33 = vmul.f32 %v1919_v11, %v1919_v11 }
  0x1a   : > { %v428_v26 = vadd.f32 %v427_v20, %v1848_v18  ;;  %v516_v41 = vadd.f32 %v515_v34, %v514_v38  ;;  %v498_v53 = vmul.f32 %v1941_v31, %v1941_v31 }
  0x1c   : > { %v430_v30 = vadd.f32 %v429_v22, %v428_v26  ;;  %v517_v48 = vadd.f32 %v516_v41, %v483_v37  ;;  %v496_v41 = vmul.f32 %v1927_v19, %v1927_v19 }
  0x1e   : > { %v431_v36 = vadd.f32 %v430_v30, %v1863_v29  ;;  %v519_v51 = vadd.f32 %v518_v44, %v517_v48  ;;  %v530_v30 = vsel %vm419_vm0, %v492_v16, 0.0  ;;  %v1961_v48 = vld [vmem:[%s1807_s22 + $0xb0] sm:$0xff] }
  0x1f   : > { %v1989_v16 = vld [vmem:[%s1807_s22 + $0xd0] sm:$0xff] }
  0x20   : > { %v433_v40 = vadd.f32 %v432_v32, %v431_v36  ;;  %v520_v58 = vadd.f32 %v519_v51, %v485_v47  ;;  %v1947_v36 = vld [vmem:[%s1807_s22 + $0xa0] sm:$0xff] }
  0x22   : > { %v434_v46 = vadd.f32 %v433_v40, %v1877_v39  ;;  %v522_v61 = vadd.f32 %v521_v54, %v520_v58  ;;  %v450_v40 = vsel %vm419_vm0, %v1941_v31, 0.0  ;;  %v536_v54 = vsel %vm419_vm0, %v496_v41, 0.0  ;;  %v2011_v41 = vld [vmem:[%s1807_s22 + $0xf8] sm:$0xff] }
  0x23   : > { %v497_v58 = vmul.f32 %v1947_v36, %v1947_v36 }
  0x24   : > { %v436_v50 = vadd.f32 %v435_v42, %v434_v46  ;;  %v523_v10 = vadd.f32 %v522_v61, %v487_v57  ;;  %v533_v42 = vsel %vm419_vm0, %v494_v28, 0.0  ;;  %v495_v46 = vmul.f32 %v1933_v23, %v1933_v23  ;;  %v1975_v61 = vld [vmem:[%s1807_s22 + $0xc0] sm:$0xff] }
  0x25   : > { %v501_v28 = vmul.f32 %v1975_v61, %v1975_v61 }
  0x26   : > { %v437_v56 = vadd.f32 %v436_v50, %v1891_v49  ;;  %v525_v13 = vadd.f32 %v524_v4, %v523_v10  ;;  %v1983_v10 = vld [vmem:[%s1807_s22 + $0xd8] sm:$0xff] }
  0x28   : > { %v439_v60 = vadd.f32 %v438_v52, %v437_v56  ;;  %v526_v22 = vadd.f32 %v525_v13, %v489_v8  ;;  %v453_v52 = vsel %vm419_vm0, %v1955_v43, 0.0  ;;  %v1969_v56 = vld [vmem:[%s1807_s22 + $0xc8] sm:$0xff]  ;;  %v539_v8 = vsel %vm419_vm0, %v498_v53, 0.0 }
  0x29   : > { %v456_v4 = vsel %vm419_vm0, %v1969_v56, 0.0  ;;  %v499_v13 = vmul.f32 %v1961_v48, %v1961_v48 }
  0x2a   : > { %v440_v6 = vadd.f32 %v439_v60, %v1905_v59  ;;  %v528_v26 = vadd.f32 %v527_v17, %v526_v22  ;;  %v502_v22 = vmul.f32 %v1969_v56, %v1969_v56 }
  0x2c   : > { %v442_v12 = vadd.f32 %v441_v62, %v440_v6  ;;  %v529_v34 = vadd.f32 %v528_v26, %v491_v21  ;;  %v500_v6 = vmul.f32 %v1955_v43, %v1955_v43  ;;  %v459_v21 = vsel %vm419_vm0, %v1983_v10, 0.0  ;;  %v1997_v26 = vld [vmem:[%s1807_s22 + $0xe8] sm:$0xff] }
  0x2d   : > { %v506_v53 = vmul.f32 %v1997_v26, %v1997_v26 }
  0x2e   : > { %v443_v20 = vadd.f32 %v442_v12, %v1919_v11  ;;  %v531_v38 = vadd.f32 %v530_v30, %v529_v34 }
  0x30   : > { %v445_v24 = vadd.f32 %v444_v14, %v443_v20  ;;  %v532_v47 = vadd.f32 %v531_v38, %v493_v33  ;;  %v504_v38 = vmul.f32 %v1983_v10, %v1983_v10 }
  0x32   : > { %v446_v32 = vadd.f32 %v445_v24, %v1933_v23  ;;  %v534_v51 = vadd.f32 %v533_v42, %v532_v47  ;;  %v542_v24 = vsel %vm419_vm0, %v500_v6, 0.0  ;;  %v2017_v47 = vld [vmem:[%s1807_s22 + $0xf0] sm:$0xff]  ;;  %v551_v6 = vsel %vm419_vm0, %v506_v53, 0.0 }
  0x34   : > { %v448_v37 = vadd.f32 %v447_v27, %v446_v32  ;;  %v535_v60 = vadd.f32 %v534_v51, %v495_v46  ;;  %v2003_v32 = vld [vmem:[%s1807_s22 + $0xe0] sm:$0xff] }
  0x36   : > { %v449_v44 = vadd.f32 %v448_v37, %v1947_v36  ;;  %v537_v63 = vadd.f32 %v536_v54, %v535_v60  ;;  %v462_v37 = vsel %vm419_vm0, %v1997_v26, 0.0  ;;  %v548_v54 = vsel %vm419_vm0, %v504_v38, 0.0 }
  0x38   : > { %v451_v50 = vadd.f32 %v450_v40, %v449_v44  ;;  %v538_v14 = vadd.f32 %v537_v63, %v497_v58  ;;  %v545_v40 = vsel %vm419_vm0, %v502_v22, 0.0  ;;  %v503_v44 = vmul.f32 %v1989_v16, %v1989_v16 }
  0x39   : > { %v505_v58 = vmul.f32 %v2003_v32, %v2003_v32 }
  0x3a   : > { %v452_v57 = vadd.f32 %v451_v50, %v1961_v48  ;;  %v540_v20 = vadd.f32 %v539_v8, %v538_v14  ;;  %v507_v8 = vmul.f32 %v2017_v47, %v2017_v47 }
  0x3c   : > { %v454_v62 = vadd.f32 %v453_v52, %v452_v57  ;;  %v541_v30 = vadd.f32 %v540_v20, %v499_v13  ;;  %v465_v52 = vsel %vm419_vm0, %v2011_v41, 0.0 }
  0x3e   : > { %v455_v12 = vadd.f32 %v454_v62, %v1975_v61  ;;  %v543_v34 = vadd.f32 %v542_v24, %v541_v30 }
  0x40   : > { %v457_v17 = vadd.f32 %v456_v4, %v455_v12  ;;  %v544_v46 = vadd.f32 %v543_v34, %v501_v28  ;;  %v508_v4 = vmul.f32 %v2011_v41, %v2011_v41 }
  0x42   : > { %v458_v27 = vadd.f32 %v457_v17, %v1989_v16  ;;  %v546_v51 = vadd.f32 %v545_v40, %v544_v46  ;;  %v554_v14 = vsel %vm419_vm0, %v508_v4, 0.0 }
  0x44   : > { %v460_v33 = vadd.f32 %v459_v21, %v458_v27  ;;  %v547_v60 = vadd.f32 %v546_v51, %v503_v44  ;;  %v1730_v51 = vmov 0  }
  0x45   : > { %1669 = vset.pattern.permute.xlu1 %v1730_v51  ;;  %1670 = vset.pattern.permute.xlu2 %v1730_v51 }
  0x46   : > { %v461_v42 = vadd.f32 %v460_v33, %v2003_v32  ;;  %v549_v63 = vadd.f32 %v548_v54, %v547_v60  ;;  %1671 = vset.pattern.permute.xlu0 %v1730_v51 }
  0x48   : > { %v463_v50 = vadd.f32 %v462_v37, %v461_v42  ;;  %v550_v12 = vadd.f32 %v549_v63, %v505_v58 }
  0x4a   : > { %v464_v57 = vadd.f32 %v463_v50, %v2017_v47  ;;  %v552_v13 = vadd.f32 %v551_v6, %v550_v12  ;;  %v778_v50 = vld [vmem:[%s2753_s4 + $0x8] sm:$0xff]  ;;  %v1064_v6 = vld [vmem:[%s2757_s8] sm:$0xff]  ;;  %v1227_v12 = vld [vmem:[%s2759_s10 + $0x18] sm:$0xff] }
  0x4b   : > { %786 = vperm.xlu1 %1669, %v778_v50  }
  0x4c   : > { %v466_v62 = vadd.f32 %v465_v52, %v464_v57  ;;  %v553_v17 = vadd.f32 %v552_v13, %v507_v8  ;;  %v777_v52 = vld [vmem:[%s2753_s4] sm:$0xff]  ;;  %v1225_v8 = vld [vmem:[%s2759_s10 + $0x8] sm:$0xff] }
  0x4e   : > { %467 = vadd.xlane.f32.xlu0 %v466_v62  ;;  %v555_v20 = vadd.f32 %v554_v14, %v553_v17  ;;  %v1229_v14 = vld [vmem:[%s2759_s10 + $0x28] sm:$0xff] }
  0x53   : > { %781 = vperm.xlu1 %1669, %v777_v52  }
  0x56   : > { %556 = vadd.xlane.f32.xlu0 %v555_v20 }
  0x5b   : > { %1068 = vperm.xlu1 %1669, %v1064_v6  }
  0x63   : > { %1247 = vperm.xlu1 %1669, %v1225_v8  }
  0x6b   : > { %1257 = vperm.xlu1 %1669, %v1227_v12  }
  0x73   : > { %1267 = vperm.xlu1 %1669, %v1229_v14  }
  0xc1   : > { %v468_v21 = vpop.xlane.xlu0 %467 }
  0xc2   : > { %v469_v22 = vrot.slane %v468_v21, 4 }
  0xc4   : > { %v470_v24 = vadd.f32 %v469_v22, %v468_v21 }
  0xc6   : > { %v471_v27 = vrot.slane %v470_v24, 2 }
  0xc8   : > { %v472_v28 = vadd.f32 %v471_v27, %v470_v24 }
  0xc9   : > { %v557_v30 = vpop.xlane.xlu0 %556 }
  0xca   : > { %v558_v33 = vrot.slane %v557_v30, 4  ;;  %v473_v34 = vrot.slane %v472_v28, 1 }
  0xcc   : > { %v559_v37 = vadd.f32 %v558_v33, %v557_v30  ;;  %v474_v38 = vadd.f32 %v473_v34, %v472_v28  ;;  %v678_v33 = vld [vmem:[%s2750_s1 + $0xf8] sm:$0xff]  ;;  %v675_v34 = vld [vmem:[%s2750_s1 + $0xe0] sm:$0xff] }
  0xce   : > { %v560_v40 = vrot.slane %v559_v37, 2  ;;  %1654 = vpush %v474_v38 }
  0xd0   : > { %v561_v42 = vadd.f32 %v560_v40, %v559_v37  ;;  %v676_v37 = vld [vmem:[%s2750_s1 + $0xe8] sm:$0xff] }
  0xd2   : > { %v562_v44 = vrot.slane %v561_v42, 1 }
  0xd4   : > { %v563_v46 = vadd.f32 %v562_v44, %v561_v42 }
  0xd6   : > { %1656 = vpush %v563_v46  ;;  %v741_v46 = vld [vmem:[%s2751_s2 + $0xf0] sm:$0xff] }
  0xff   : > { %s1655_s23 = spop %1654 }
 0x100   : > { %s476_s26 = smul.f32 3.9859693e-05, %s1655_s23 }
 0x102   : > { %s566_s27 = smul.f32 %s476_s26, %s476_s26  ;;  %v2048_v13 = vstv %s476_s26 }
 0x103   : > { %v613_v17 = vsub.f32 %v2011_v41, %v2048_v13  ;;  %v612_v20 = vsub.f32 %v2017_v47, %v2048_v13  ;;  %v610_v21 = vsub.f32 %v2003_v32, %v2048_v13  ;;  %v611_v22 = vsub.f32 %v1997_v26, %v2048_v13 }
 0x104   : > { %v608_v24 = vsub.f32 %v1989_v16, %v2048_v13  ;;  %v609_v27 = vsub.f32 %v1983_v10, %v2048_v13  ;;  %v606_v28 = vsub.f32 %v1975_v61, %v2048_v13  ;;  %v607_v41 = vsub.f32 %v1969_v56, %v2048_v13  ;;  %v677_v56 = vld [vmem:[%s2750_s1 + $0xf0] sm:$0xff] }
 0x105   : > { %v604_v47 = vsub.f32 %v1961_v48, %v2048_v13  ;;  %v605_v32 = vsub.f32 %v1955_v43, %v2048_v13  ;;  %v602_v26 = vsub.f32 %v1947_v36, %v2048_v13  ;;  %v603_v16 = vsub.f32 %v1941_v31, %v2048_v13 }
 0x106   : > { %v600_v10 = vsub.f32 %v1933_v23, %v2048_v13  ;;  %v601_v48 = vsub.f32 %v1927_v19, %v2048_v13  ;;  %v598_v43 = vsub.f32 %v1919_v11, %v2048_v13  ;;  %v599_v36 = vsub.f32 %v1913_v5, %v2048_v13  ;;  %v730_v5 = vld [vmem:[%s2751_s2 + $0x98] sm:$0xff] }
 0x107   : > { %s1657_s28 = spop %1656  ;;  %v596_v61 = vsub.f32 %v1905_v59, %v2048_v13  ;;  %v597_v38 = vsub.f32 %v1899_v55, %v2048_v13  ;;  %v594_v40 = vsub.f32 %v1891_v49, %v2048_v13  ;;  %v595_v42 = vsub.f32 %v1885_v45, %v2048_v13  ;;  %v727_v59 = vld [vmem:[%s2751_s2 + $0x80] sm:$0xff]  ;;  %v660_v49 = vld [vmem:[%s2750_s1 + $0x68] sm:$0xff] }
 0x108   : > { %s565_s29 = smul.f32 3.9859693e-05, %s1657_s28  ;;  %v1237_v45 = vld [vmem:[%s2759_s10 + $0x68] sm:$0xff] }
 0x10a   : > { %s567_s13 = ssub.f32 %s565_s29, %s566_s27 }
 0x10c   : > { %s568_s14 = sadd.f32 1e-05, %s567_s13 }
 0x10e   : > { %v569_v53 = vstv %s568_s14 }
 0x10f   : > { %1672 = vrsqrt.f32 %v569_v53  ;;  %vm576_vm2 = vweird.f32 %v569_v53 }
 0x115   : > { %v1673_v54 = vpop.eup %1672 }
 0x116   : > { %v571_v57 = vmul.f32 %v1673_v54, %v569_v53  ;;  %vm577_vm1 = vweird.f32 %v1673_v54  ;;  %v673_v53 = vld [vmem:[%s2750_s1 + $0xd0] sm:$0xff] }
 0x117   : > { %vm578_vm3 = vmor %vm576_vm2, %vm577_vm1 }
 0x118   : > { %v572_v58 = vmul.f32 %v1673_v54, %v571_v57  ;;  %v742_v57 = vld [vmem:[%s2751_s2 + $0xf8] sm:$0xff] }
 0x11a   : > { %v573_v60 = vmul.f32 0.5, %v572_v58  ;;  %v739_v58 = vld [vmem:[%s2751_s2 + $0xe0] sm:$0xff] }
 0x11c   : > { %v574_v62 = vsub.f32 1.5, %v573_v60 }
 0x11e   : > { %v575_v63 = vmul.f32 %v1673_v54, %v574_v62 }
 0x120   : > { %v579_v4 = vsel %vm578_vm3, %v1673_v54, %v575_v63  ;;  %v1231_v54 = vld [vmem:[%s2759_s10 + $0x38] sm:$0xff] }
 0x121   : > { %1658 = vpush %v579_v4  ;;  %v674_v63 = vld [vmem:[%s2750_s1 + $0xd8] sm:$0xff]  ;;  %1277 = vperm.xlu1 %1669, %v1231_v54  }
 0x152   : > { %s1659_s26 = spop %1658 }
 0x153   : > { %v2090_v30 = vstv %s1659_s26 }
 0x154   : > { %v645_v44 = vmul.f32 %v2090_v30, %v612_v20  ;;  %v646_v50 = vmul.f32 %v2090_v30, %v613_v17  ;;  %v643_v51 = vmul.f32 %v2090_v30, %v610_v21  ;;  %v644_v52 = vmul.f32 %v2090_v30, %v611_v22  ;;  %v740_v20 = vld [vmem:[%s2751_s2 + $0xe8] sm:$0xff]  ;;  %v671_v21 = vld [vmem:[%s2750_s1 + $0xc0] sm:$0xff] }
 0x155   : > { %v641_v60 = vmul.f32 %v2090_v30, %v608_v24  ;;  %v642_v62 = vmul.f32 %v2090_v30, %v609_v27  ;;  %v639_v4 = vmul.f32 %v2090_v30, %v606_v28  ;;  %v640_v6 = vmul.f32 %v2090_v30, %v607_v41  ;;  %v672_v22 = vld [vmem:[%s2750_s1 + $0xc8] sm:$0xff] }
 0x156   : > { %v709_v8 = vmul.f32 %v677_v56, %v645_v44  ;;  %v710_v12 = vmul.f32 %v678_v33, %v646_v50  ;;  %v707_v14 = vmul.f32 %v675_v34, %v643_v51  ;;  %v708_v17 = vmul.f32 %v676_v37, %v644_v52  ;;  %v737_v34 = vld [vmem:[%s2751_s2 + $0xd0] sm:$0xff]  ;;  %v738_v52 = vld [vmem:[%s2751_s2 + $0xd8] sm:$0xff] }
 0x157   : > { %v705_v24 = vmul.f32 %v673_v53, %v641_v60  ;;  %v592_v27 = vsub.f32 %v1877_v39, %v2048_v13  ;;  %v593_v28 = vsub.f32 %v1871_v35, %v2048_v13  ;;  %v590_v41 = vsub.f32 %v1863_v29, %v2048_v13  ;;  %v736_v60 = vld [vmem:[%s2751_s2 + $0xc8] sm:$0xff]  ;;  %v657_v39 = vld [vmem:[%s2750_s1 + $0x50] sm:$0xff]  ;;  %v658_v35 = vld [vmem:[%s2750_s1 + $0x58] sm:$0xff] }
 0x158   : > { %v773_v56 = vadd.f32 %v741_v46, %v709_v8  ;;  %v774_v33 = vadd.f32 %v742_v57, %v710_v12  ;;  %v706_v37 = vmul.f32 %v674_v63, %v642_v62  ;;  %v591_v44 = vsub.f32 %v1857_v25, %v2048_v13  ;;  %v669_v46 = vld [vmem:[%s2750_s1 + $0xb0] sm:$0xff]  ;;  %v670_v57 = vld [vmem:[%s2750_s1 + $0xb8] sm:$0xff]  ;;  %v667_v12 = vld [vmem:[%s2750_s1 + $0xa0] sm:$0xff] }
 0x159   : > { %v771_v50 = vadd.f32 %v739_v58, %v707_v14  ;;  %v772_v51 = vadd.f32 %v740_v20, %v708_v17  ;;  %v703_v53 = vmul.f32 %v671_v21, %v639_v4  ;;  %v704_v54 = vmul.f32 %v672_v22, %v640_v6  ;;  %v735_v58 = vld [vmem:[%s2751_s2 + $0xc0] sm:$0xff]  ;;  %v1234_v6 = vld [vmem:[%s2759_s10 + $0x50] sm:$0xff]  ;;  %v666_v21 = vld [vmem:[%s2750_s1 + $0x98] sm:$0xff] }
 0x15a   : > { %789 = vmatpush.msra.mxu0 %v773_v56  ;;  %812 = vmatpush.msra.mxu1 %v774_v33  ;;  %v637_v62 = vmul.f32 %v2090_v30, %v604_v47  ;;  %v638_v63 = vmul.f32 %v2090_v30, %v605_v32  ;;  %v635_v4 = vmul.f32 %v2090_v30, %v602_v26  ;;  %v668_v47 = vld [vmem:[%s2750_s1 + $0xa8] sm:$0xff]  ;;  %v665_v26 = vld [vmem:[%s2750_s1 + $0x90] sm:$0xff] }
 0x15b   : > { %v769_v8 = vadd.f32 %v737_v34, %v705_v24  ;;  %v636_v14 = vmul.f32 %v2090_v30, %v603_v16  ;;  %v633_v32 = vmul.f32 %v2090_v30, %v600_v10  ;;  %v634_v31 = vmul.f32 %v2090_v30, %v601_v48  ;;  %v733_v20 = vld [vmem:[%s2751_s2 + $0xb0] sm:$0xff]  ;;  %v734_v10 = vld [vmem:[%s2751_s2 + $0xb8] sm:$0xff]  ;;  %1292 = vperm.xlu1 %1669, %v1234_v6   ;;  %v724_v29 = vld [vmem:[%s2751_s2 + $0x68] sm:$0xff] }
 0x15c   : > { %790 = vmatpush.msra.mxu0 %v771_v50  ;;  %813 = vmatpush.msra.mxu1 %v772_v51  ;;  %v770_v16 = vadd.f32 %v738_v52, %v706_v37  ;;  %v701_v17 = vmul.f32 %v669_v46, %v637_v62  ;;  %v702_v23 = vmul.f32 %v670_v57, %v638_v63  ;;  %v663_v37 = vld [vmem:[%s2750_s1 + $0x80] sm:$0xff]  ;;  %v732_v51 = vld [vmem:[%s2751_s2 + $0xa8] sm:$0xff]  ;;  %v729_v46 = vld [vmem:[%s2751_s2 + $0x90] sm:$0xff] }
 0x15d   : > { %v767_v19 = vadd.f32 %v735_v58, %v703_v53  ;;  %v631_v48 = vmul.f32 %v2090_v30, %v598_v43  ;;  %v588_v22 = vsub.f32 %v1848_v18, %v2048_v13  ;;  %v589_v24 = vsub.f32 %v1842_v15, %v2048_v13  ;;  %v731_v43 = vld [vmem:[%s2751_s2 + $0xa0] sm:$0xff] }
 0x15e   : > { %791 = vmatpush.msra.mxu0 %v769_v8  ;;  %814 = vmatpush.msra.mxu1 %v770_v16  ;;  %v768_v56 = vadd.f32 %v736_v60, %v704_v54  ;;  %v699_v33 = vmul.f32 %v667_v12, %v635_v4  ;;  %v700_v34 = vmul.f32 %v668_v47, %v636_v14  ;;  %v664_v54 = vld [vmem:[%s2750_s1 + $0x88] sm:$0xff]  ;;  %v661_v60 = vld [vmem:[%s2750_s1 + $0x70] sm:$0xff]  ;;  %v659_v12 = vld [vmem:[%s2750_s1 + $0x60] sm:$0xff] }
 0x15f   : > { %v765_v50 = vadd.f32 %v733_v20, %v701_v17  ;;  %v766_v11 = vadd.f32 %v734_v10, %v702_v23  ;;  %v697_v52 = vmul.f32 %v665_v26, %v633_v32  ;;  %v698_v53 = vmul.f32 %v666_v21, %v634_v31  ;;  %v725_v31 = vld [vmem:[%s2751_s2 + $0x70] sm:$0xff]  ;;  %v655_v21 = vld [vmem:[%s2750_s1 + $0x40] sm:$0xff] }
 0x160   : > { %792 = vmatpush.msra.mxu0 %v767_v19  ;;  %815 = vmatpush.msra.mxu1 %v768_v56  ;;  %v632_v57 = vmul.f32 %v2090_v30, %v599_v36  ;;  %v629_v58 = vmul.f32 %v2090_v30, %v596_v61  ;;  %v630_v62 = vmul.f32 %v2090_v30, %v597_v38  ;;  %v662_v36 = vld [vmem:[%s2750_s1 + $0x78] sm:$0xff] }
 0x161   : > { %v695_v63 = vmul.f32 %v663_v37, %v631_v48  ;;  %v627_v55 = vmul.f32 %v2090_v30, %v594_v40  ;;  %v628_v61 = vmul.f32 %v2090_v30, %v595_v42  ;;  %v586_v38 = vsub.f32 %v1831_v9, %v2048_v13  ;;  %v728_v9 = vld [vmem:[%s2751_s2 + $0x88] sm:$0xff]  ;;  %v722_v37 = vld [vmem:[%s2751_s2 + $0x58] sm:$0xff] }
 0x162   : > { %793 = vmatpush.msra.mxu0 %v765_v50  ;;  %816 = vmatpush.msra.mxu1 %v766_v11  ;;  %v763_v4 = vadd.f32 %v731_v43, %v699_v33  ;;  %v764_v6 = vadd.f32 %v732_v51, %v700_v34  ;;  %v696_v8 = vmul.f32 %v664_v54, %v632_v57  ;;  %v656_v33 = vld [vmem:[%s2750_s1 + $0x48] sm:$0xff]  ;;  %v721_v34 = vld [vmem:[%s2751_s2 + $0x50] sm:$0xff]  ;;  %v654_v51 = vld [vmem:[%s2750_s1 + $0x38] sm:$0xff] }
 0x163   : > { %v693_v40 = vmul.f32 %v661_v60, %v629_v58  ;;  %v625_v42 = vmul.f32 %v2090_v30, %v592_v27  ;;  %v626_v14 = vmul.f32 %v2090_v30, %v593_v28  ;;  %v587_v47 = vsub.f32 %v1827_v7, %v2048_v13  ;;  %v726_v7 = vld [vmem:[%s2751_s2 + $0x78] sm:$0xff]  ;;  %1307 = vperm.xlu1 %1669, %v1237_v45   ;;  %v653_v43 = vld [vmem:[%s2750_s1 + $0x30] sm:$0xff]  ;;  %v652_v57 = vld [vmem:[%s2750_s1 + $0x28] sm:$0xff] }
 0x164   : > { %794 = vmatpush.msra.mxu0 %v763_v4  ;;  %817 = vmatpush.msra.mxu1 %v764_v6  ;;  %v761_v32 = vadd.f32 %v729_v46, %v697_v52  ;;  %v762_v26 = vadd.f32 %v730_v5, %v698_v53  ;;  %v694_v16 = vmul.f32 %v662_v36, %v630_v62  ;;  %v719_v53 = vld [vmem:[%s2751_s2 + $0x40] sm:$0xff]  ;;  %v649_v36 = vld [vmem:[%s2750_s1 + $0x10] sm:$0xff]  ;;  %v718_v4 = vld [vmem:[%s2751_s2 + $0x38] sm:$0xff] }
 0x165   : > { %v759_v27 = vadd.f32 %v727_v59, %v695_v63  ;;  %v691_v28 = vmul.f32 %v659_v12, %v627_v55  ;;  %v692_v17 = vmul.f32 %v660_v49, %v628_v61  ;;  %v584_v20 = vsub.f32 %v1816_v2, %v2048_v13  ;;  %v723_v2 = vld [vmem:[%s2751_s2 + $0x60] sm:$0xff]  ;;  %v650_v6 = vld [vmem:[%s2750_s1 + $0x18] sm:$0xff] }
 0x166   : > { %795 = vmatpush.msra.mxu0 %v761_v32  ;;  %818 = vmatpush.msra.mxu1 %v762_v26  ;;  %v760_v23 = vadd.f32 %v728_v9, %v696_v8  ;;  %v623_v10 = vmul.f32 %v2090_v30, %v590_v41  ;;  %v624_v19 = vmul.f32 %v2090_v30, %v591_v44  ;;  %v651_v46 = vld [vmem:[%s2750_s1 + $0x20] sm:$0xff]  ;;  %v716_v9 = vld [vmem:[%s2751_s2 + $0x28] sm:$0xff] }
 0x167   : > { %v757_v48 = vadd.f32 %v725_v31, %v693_v40  ;;  %v689_v56 = vmul.f32 %v657_v39, %v625_v42  ;;  %v690_v41 = vmul.f32 %v658_v35, %v626_v14  ;;  %v585_v25 = vsub.f32 %v1819_v3, %v2048_v13  ;;  %v715_v12 = vld [vmem:[%s2751_s2 + $0x20] sm:$0xff]  ;;  %v648_v14 = vld [vmem:[%s2750_s1 + $0x8] sm:$0xff] }
 0x168   : > { %796 = vmatpush.msra.mxu0 %v759_v27  ;;  %819 = vmatpush.msra.mxu1 %v760_v23  ;;  %v758_v44 = vadd.f32 %v726_v7, %v694_v16  ;;  %v621_v50 = vmul.f32 %v2090_v30, %v588_v22  ;;  %v622_v3 = vmul.f32 %v2090_v30, %v589_v24  ;;  %v647_v42 = vld [vmem:[%s2750_s1] sm:$0xff]  ;;  %v714_v16 = vld [vmem:[%s2751_s2 + $0x18] sm:$0xff] }
 0x169   : > { %v687_v11 = vmul.f32 %v655_v21, %v623_v10  ;;  %v619_v52 = vmul.f32 %v2090_v30, %v586_v38  ;;  %v620_v18 = vmul.f32 %v2090_v30, %v587_v47  ;;  %v582_v22 = vsub.f32 %v1810_v0, %v2048_v13  ;;  %v720_v0 = vld [vmem:[%s2751_s2 + $0x48] sm:$0xff]  ;;  %v717_v38 = vld [vmem:[%s2751_s2 + $0x30] sm:$0xff]  ;;  %v711_v7 = vld [vmem:[%s2751_s2] sm:$0xff] }
 0x16a   : > { %797 = vmatpush.msra.mxu0 %v757_v48  ;;  %820 = vmatpush.msra.mxu1 %v758_v44  ;;  %v755_v15 = vadd.f32 %v723_v2, %v691_v28  ;;  %v756_v24 = vadd.f32 %v724_v29, %v692_v17  ;;  %v688_v54 = vmul.f32 %v656_v33, %v624_v19  ;;  %v712_v28 = vld [vmem:[%s2751_s2 + $0x8] sm:$0xff]  ;;  %v775_v21 = vld [vmem:[%s2752_s3] sm:$0xff]  ;;  %v787_v48 = vpop.permute.xlu1 %786 }
 0x16b   : > { %v753_v58 = vadd.f32 %v721_v34, %v689_v56  ;;  %v754_v60 = vadd.f32 %v722_v37, %v690_v41  ;;  %v617_v62 = vmul.f32 %v2090_v30, %v584_v20  ;;  %v583_v5 = vsub.f32 %v1813_v1, %v2048_v13  ;;  %v776_v19 = vld [vmem:[%s2752_s3 + $0x8] sm:$0xff]  ;;  %v917_v56 = vld [vmem:[%s2755_s6] sm:$0xff] }
 0x16c   : > { %798 = vmatpush.msra.mxu0 %v755_v15  ;;  %821 = vmatpush.msra.mxu1 %v756_v24  ;;  %v685_v63 = vmul.f32 %v653_v43, %v621_v50  ;;  %v686_v59 = vmul.f32 %v654_v51, %v622_v3  ;;  %v618_v55 = vmul.f32 %v2090_v30, %v585_v25  ;;  %v918_v2 = vld [vmem:[%s2755_s6 + $0x8] sm:$0xff]  ;;  %v1224_v50 = vld [vmem:[%s2759_s10] sm:$0xff] }
 0x16d   : > { %v751_v61 = vadd.f32 %v719_v53, %v687_v11  ;;  %v683_v1 = vmul.f32 %v651_v46, %v619_v52  ;;  %v684_v13 = vmul.f32 %v652_v57, %v620_v18  ;;  %v752_v8 = vadd.f32 %v720_v0, %v688_v54  ;;  %926 = vperm.xlu2 %1670, %v918_v2   ;;  %v1226_v54 = vld [vmem:[%s2759_s10 + $0x10] sm:$0xff] }
 0x16e   : > { %799 = vmatpush.msra.mxu0 %v753_v58  ;;  %822 = vmatpush.msra.mxu1 %v754_v60  ;;  %v615_v49 = vmul.f32 %v2090_v30, %v582_v22  ;;  %v616_v45 = vmul.f32 %v2090_v30, %v583_v5  ;;  %v681_v40 = vmul.f32 %v649_v36, %v617_v62  ;;  %v713_v30 = vld [vmem:[%s2751_s2 + $0x10] sm:$0xff]  ;;  %v1228_v36 = vld [vmem:[%s2759_s10 + $0x20] sm:$0xff] }
 0x16f   : > { %v749_v47 = vadd.f32 %v717_v38, %v685_v63  ;;  %v750_v32 = vadd.f32 %v718_v4, %v686_v59  ;;  %v682_v26 = vmul.f32 %v650_v6, %v618_v55  ;;  %v747_v31 = vadd.f32 %v715_v12, %v683_v1 }
 0x170   : > { %800 = vmatpush.msra.mxu0 %v751_v61  ;;  %823 = vmatpush.msra.mxu1 %v752_v8  ;;  %v748_v39 = vadd.f32 %v716_v9, %v684_v13  ;;  %v679_v35 = vmul.f32 %v647_v42, %v615_v49  ;;  %v680_v27 = vmul.f32 %v648_v14, %v616_v45  ;;  %v1230_v45 = vld [vmem:[%s2759_s10 + $0x30] sm:$0xff] }
 0x171   : > { %v745_v17 = vadd.f32 %v713_v30, %v681_v40  ;;  %v746_v20 = vadd.f32 %v714_v16, %v682_v26 }
 0x172   : > { %801 = vmatpush.msra.mxu0 %v749_v47  ;;  %824 = vmatpush.msra.mxu1 %v750_v32  ;;  %v743_v23 = vadd.f32 %v711_v7, %v679_v35  ;;  %v744_v10 = vadd.f32 %v712_v28, %v680_v27  ;;  %v782_v29 = vpop.permute.xlu1 %781 }
 0x174   : > { %802 = vmatpush.msra.mxu0 %v747_v31  ;;  %825 = vmatpush.msra.mxu1 %v748_v39 }
 0x175   : > { %921 = vperm.xlu2 %1670, %v917_v56  }
 0x176   : > { %803 = vmatpush.msra.mxu0 %v745_v17  ;;  %826 = vmatpush.msra.mxu1 %v746_v20 }
 0x178   : > { %804 = vmatpush.msra.mxu0 %v743_v23  ;;  %827 = vmatpush.msra.mxu1 %v744_v10 }
 0x179   : > { %805 = vmatmul.f32.vlgmr.msra.gmra.mxu0 %v775_v21  ;;  %828 = vmatmul.f32.vlgmr.msra.gmra.mxu1 %v775_v21 }
 0x17d   : > { %1242 = vperm.xlu2 %1670, %v1224_v50  }
 0x181   : > { %808 = vmatmul.f32.gmra.mxu0 %v776_v19  ;;  %831 = vmatmul.f32.gmra.mxu1 %v776_v19 }
 0x185   : > { %1252 = vperm.xlu2 %1670, %v1226_v54  }
 0x18d   : > { %1262 = vperm.xlu2 %1670, %v1228_v36  }
 0x195   : > { %1272 = vperm.xlu2 %1670, %v1230_v45   ;;  %v1233_v45 = vld [vmem:[%s2759_s10 + $0x48] sm:$0xff] }
 0x1f6   : > { %v806_v41 = vpop.f32.mrf.mxu0  ;;  %v829_v33 = vpop.f32.mrf.mxu1 }
 0x1f7   : > { %v2409_v25 = vadd.f32 %v806_v41, %v782_v29  ;;  %v2411_v44 = vadd.f32 %v829_v33, %v782_v29  ;;  %v1232_v41 = vld [vmem:[%s2759_s10 + $0x40] sm:$0xff] }
 0x1f8   : > { %1282 = vperm.xlu2 %1670, %v1232_v41  }
 0x1f9   : > { %v1594_v34 = vmul.f32 -1.442695, %v2409_v25  ;;  %v1595_v37 = vmul.f32 -1.442695, %v2411_v44 }
 0x1fb   : > { %1674 = vpow2.f32 %v1594_v34 }
 0x1fc   : > { %1676 = vpow2.f32 %v1595_v37 }
 0x1fe   : > { %v809_v3 = vpop.f32.mrf.mxu0  ;;  %v832_v11 = vpop.f32.mrf.mxu1 }
 0x1ff   : > { %v2418_v43 = vadd.f32 %v809_v3, %v787_v48  ;;  %v2420_v51 = vadd.f32 %v832_v11, %v787_v48  ;;  %v915_v3 = vld [vmem:[%s2754_s5] sm:$0xff] }
 0x201   : > { %v1675_v52 = vpop.eup %1674  ;;  %v1596_v18 = vmul.f32 -1.442695, %v2418_v43  ;;  %v1597_v24 = vmul.f32 -1.442695, %v2420_v51 }
 0x202   : > { %v1677_v22 = vpop.eup %1676  ;;  %v847_v15 = vadd.f32 1.0, %v1675_v52  ;;  %v916_v52 = vld [vmem:[%s2754_s5 + $0x8] sm:$0xff] }
 0x203   : > { %v2424_v53 = vadd.f32 1.0, %v1677_v22  ;;  %1678 = vpow2.f32 %v1596_v18 }
 0x204   : > { %1680 = vrcp.f32 %v847_v15  ;;  %vm856_vm4 = vweird.f32 %v847_v15  ;;  %v862_v1 = vand.u32 2147483648, %v847_v15  ;;  %v860_v49 = vand.u32 2147483647, %v847_v15 }
 0x205   : > { %1682 = vrcp.f32 %v2424_v53  ;;  %vm871_vm6 = vweird.f32 %v2424_v53  ;;  %v875_v42 = vand.u32 2147483647, %v2424_v53  ;;  %v877_v32 = vand.u32 2147483648, %v2424_v53 }
 0x206   : > { %1684 = vpow2.f32 %v1597_v24  ;;  %v863_v30 = vor.u32 1.1754944e-38, %v862_v1  ;;  %vm861_vm15 = vcmp.eq.f32.partialorder %v860_v49, 8.507059e+37 }
 0x207   : > { %v878_v56 = vor.u32 1.1754944e-38, %v877_v32 }
 0x209   : > { %v1679_v46 = vpop.eup %1678 }
 0x20a   : > { %v1681_v57 = vpop.eup %1680  ;;  %v849_v58 = vadd.f32 1.0, %v1679_v46 }
 0x20b   : > { %v2430_v60 = vpop.eup %1682  ;;  %v852_v0 = vmul.f32 %v1681_v57, %v847_v15  ;;  %vm857_vm5 = vweird.f32 %v1681_v57 }
 0x20c   : > { %v1685_v62 = vpop.eup %1684  ;;  %1686 = vrcp.f32 %v849_v58  ;;  %v867_v59 = vmul.f32 %v2430_v60, %v2424_v53  ;;  %v892_v9 = vand.u32 2147483648, %v849_v58  ;;  %v890_v47 = vand.u32 2147483647, %v849_v58  ;;  %vm2445_vm8 = vmor %vm856_vm4, %vm857_vm5 }
 0x20d   : > { %v850_v5 = vadd.f32 1.0, %v1685_v62  ;;  %v853_v63 = vsub.f32 1.0, %v852_v0  ;;  %vm872_vm9 = vweird.f32 %v2430_v60  ;;  %vm886_vm10 = vweird.f32 %v849_v58 }
 0x20e   : > { %v868_v55 = vsub.f32 1.0, %v867_v59  ;;  %v893_v7 = vor.u32 1.1754944e-38, %v892_v9  ;;  %vm891_vm13 = vcmp.eq.f32.partialorder %v890_v47, 8.507059e+37  ;;  %vm2457_vm1 = vmor %vm871_vm6, %vm872_vm9  ;;  %vm876_vm4 = vcmp.eq.f32.partialorder %v875_v42, 8.507059e+37 }
 0x20f   : > { %1688 = vrcp.f32 %v850_v5  ;;  %v854_v61 = vmul.f32 %v1681_v57, %v853_v63  ;;  %v907_v35 = vand.u32 2147483648, %v850_v5  ;;  %v905_v17 = vand.u32 2147483647, %v850_v5 }
 0x210   : > { %v869_v13 = vmul.f32 %v2430_v60, %v868_v55  ;;  %vm901_vm14 = vweird.f32 %v850_v5  ;;  %vm929_vm5 = vcmask 130048  }
 0x211   : > { %v855_v12 = vadd.f32 %v1681_v57, %v854_v61  ;;  %v908_v29 = vor.u32 1.1754944e-38, %v907_v35  ;;  %vm906_vm3 = vcmp.eq.f32.partialorder %v905_v17, 8.507059e+37  ;;  %v1065_v61 = vld [vmem:[%s2757_s8 + $0x8] sm:$0xff] }
 0x212   : > { %v1687_v38 = vpop.eup %1686  ;;  %v870_v16 = vadd.f32 %v2430_v60, %v869_v13  ;;  %1073 = vperm.xlu0 %1671, %v1065_v61  }
 0x213   : > { %v882_v4 = vmul.f32 %v1687_v38, %v849_v58  ;;  %vm887_vm7 = vweird.f32 %v1687_v38  ;;  %v859_v27 = vsel %vm2445_vm8, %v1681_v57, %v855_v12 }
 0x214   : > { %vm888_vm11 = vmor %vm886_vm10, %vm887_vm7  ;;  %v864_v19 = vsel %vm861_vm15, %v863_v30, %v859_v27  ;;  %v874_v48 = vsel %vm2457_vm1, %v2430_v60, %v870_v16 }
 0x215   : > { %v1689_v6 = vpop.eup %1688  ;;  %v883_v8 = vsub.f32 1.0, %v882_v4  ;;  %v911_v37 = vmul.f32 %v864_v19, %v2409_v25  ;;  %v879_v50 = vsel %vm876_vm4, %v878_v56, %v874_v48  ;;  %v1235_v25 = vld [vmem:[%s2759_s10 + $0x58] sm:$0xff] }
 0x216   : > { %v897_v40 = vmul.f32 %v1689_v6, %v850_v5  ;;  %vm902_vm12 = vweird.f32 %v1689_v6  ;;  %1297 = vperm.xlu2 %1670, %v1235_v25  }
 0x217   : > { %v884_v14 = vmul.f32 %v1687_v38, %v883_v8  ;;  %vm903_vm2 = vmor %vm901_vm14, %vm902_vm12 }
 0x218   : > { %v898_v26 = vsub.f32 1.0, %v897_v40 }
 0x219   : > { %v885_v39 = vadd.f32 %v1687_v38, %v884_v14 }
 0x21a   : > { %v899_v28 = vmul.f32 %v1689_v6, %v898_v26  ;;  %1287 = vperm.xlu0 %1671, %v1233_v45   ;;  %v1236_v26 = vld [vmem:[%s2759_s10 + $0x60] sm:$0xff] }
 0x21b   : > { %v889_v20 = vsel %vm888_vm11, %v1687_v38, %v885_v39 }
 0x21c   : > { %v894_v10 = vsel %vm891_vm13, %v893_v7, %v889_v20  ;;  %v900_v21 = vadd.f32 %v1689_v6, %v899_v28 }
 0x21d   : > { %v913_v2 = vmul.f32 %v894_v10, %v2418_v43  ;;  %v912_v43 = vmul.f32 %v879_v50, %v2411_v44  ;;  %v1238_v44 = vld [vmem:[%s2759_s10 + $0x70] sm:$0xff] }
 0x21e   : > { %v904_v33 = vsel %vm903_vm2, %v1689_v6, %v900_v21  ;;  %1312 = vperm.xlu2 %1670, %v1238_v44  }
 0x21f   : > { %950 = vmatpush.msra.mxu2 %v913_v2  ;;  %v909_v34 = vsel %vm906_vm3, %v908_v29, %v904_v33 }
 0x220   : > { %v914_v11 = vmul.f32 %v909_v34, %v2420_v51  ;;  %v927_v51 = vpop.permute.xlu2 %926 }
 0x221   : > { %951 = vmatpush.msra.mxu2 %v911_v37 }
 0x222   : > { %973 = vmatpush.msra.mxu3 %v914_v11  ;;  %1598 = vmatmul.msk.f32.vlgmr.msra.gmra.mxu2 %vm929_vm5, %v915_v3 }
 0x223   : > { %1302 = vperm.xlu0 %1671, %v1236_v26  }
 0x224   : > { %974 = vmatpush.msra.mxu3 %v912_v43 }
 0x225   : > { %1600 = vmatmul.msk.f32.vlgmr.msra.gmra.mxu3 %vm929_vm5, %v915_v3  ;;  %v1239_v3 = vld [vmem:[%s2759_s10 + $0x78] sm:$0xff] }
 0x228   : > { %v922_v18 = vpop.permute.xlu2 %921 }
 0x22a   : > { %1599 = vmatmul.msk.f32.gmra.mxu2 %vm929_vm5, %v916_v52 }
 0x22b   : > { %1317 = vperm.xlu0 %1671, %v1239_v3  }
 0x22d   : > { %1601 = vmatmul.msk.f32.gmra.mxu3 %vm929_vm5, %v916_v52 }
 0x2a5   : > { %v953_v22 = vpop.f32.mrf.mxu2 }
 0x2a6   : > { %v2487_v15 = vadd.f32 %v953_v22, %v922_v18 }
 0x2a8   : > { %v1602_v24 = vmul.f32 -1.442695, %v2487_v15  ;;  %v976_v53 = vpop.f32.mrf.mxu3 }
 0x2a9   : > { %v2490_v54 = vadd.f32 %v976_v53, %v922_v18 }
 0x2aa   : > { %1690 = vpow2.f32 %v1602_v24 }
 0x2ab   : > { %v1603_v46 = vmul.f32 -1.442695, %v2490_v54 }
 0x2ad   : > { %1692 = vpow2.f32 %v1603_v46  ;;  %v956_v57 = vpop.f32.mrf.mxu2 }
 0x2ae   : > { %v2493_v58 = vadd.f32 %v956_v57, %v927_v51  ;;  %v1062_v57 = vld [vmem:[%s2756_s7] sm:$0xff] }
 0x2b0   : > { %v1691_v60 = vpop.eup %1690  ;;  %v1604_v0 = vmul.f32 -1.442695, %v2493_v58  ;;  %v979_v62 = vpop.f32.mrf.mxu3 }
 0x2b1   : > { %v2496_v5 = vadd.f32 1.0, %v1691_v60  ;;  %v2498_v63 = vadd.f32 %v979_v62, %v927_v51 }
 0x2b2   : > { %1694 = vpow2.f32 %v1604_v0  ;;  %v1069_v0 = vpop.permute.xlu1 %1068 }
 0x2b3   : > { %v1693_v59 = vpop.eup %1692  ;;  %1696 = vrcp.f32 %v2496_v5  ;;  %v1605_v36 = vmul.f32 -1.442695, %v2498_v63  ;;  %v1009_v47 = vand.u32 2147483648, %v2496_v5  ;;  %vm1003_vm6 = vweird.f32 %v2496_v5 }
 0x2b4   : > { %v2502_v55 = vadd.f32 1.0, %v1693_v59  ;;  %v1007_v35 = vand.u32 2147483647, %v2496_v5 }
 0x2b5   : > { %1698 = vpow2.f32 %v1605_v36  ;;  %v1010_v28 = vor.u32 1.1754944e-38, %v1009_v47 }
 0x2b6   : > { %1700 = vrcp.f32 %v2502_v55  ;;  %vm1018_vm8 = vweird.f32 %v2502_v55  ;;  %v1022_v23 = vand.u32 2147483647, %v2502_v55  ;;  %v1024_v48 = vand.u32 2147483648, %v2502_v55 }
 0x2b7   : > { %vm1008_vm2 = vcmp.eq.f32.partialorder %v1007_v35, 8.507059e+37 }
 0x2b8   : > { %v1695_v38 = vpop.eup %1694  ;;  %v1025_v18 = vor.u32 1.1754944e-38, %v1024_v48 }
 0x2b9   : > { %v1697_v4 = vpop.eup %1696  ;;  %v996_v1 = vadd.f32 1.0, %v1695_v38 }
 0x2ba   : > { %v999_v13 = vmul.f32 %v1697_v4, %v2496_v5  ;;  %vm1004_vm7 = vweird.f32 %v1697_v4 }
 0x2bb   : > { %v1699_v6 = vpop.eup %1698  ;;  %1702 = vrcp.f32 %v996_v1  ;;  %v1039_v27 = vand.u32 2147483648, %v996_v1  ;;  %v1037_v20 = vand.u32 2147483647, %v996_v1  ;;  %vm2527_vm10 = vmor %vm1003_vm6, %vm1004_vm7  ;;  %vm1033_vm12 = vweird.f32 %v996_v1 }
 0x2bc   : > { %v2509_v8 = vpop.eup %1700  ;;  %v997_v12 = vadd.f32 1.0, %v1699_v6  ;;  %v1000_v49 = vsub.f32 1.0, %v999_v13  ;;  %vm1023_vm7 = vcmp.eq.f32.partialorder %v1022_v23, 8.507059e+37 }
 0x2bd   : > { %v1014_v9 = vmul.f32 %v2509_v8, %v2502_v55  ;;  %vm1019_vm11 = vweird.f32 %v2509_v8  ;;  %v1040_v41 = vor.u32 1.1754944e-38, %v1039_v27  ;;  %vm1038_vm15 = vcmp.eq.f32.partialorder %v1037_v20, 8.507059e+37  ;;  %v1074_v55 = vpop.permute.xlu0 %1073 }
 0x2be   : > { %1704 = vrcp.f32 %v997_v12  ;;  %v1001_v42 = vmul.f32 %v1697_v4, %v1000_v49  ;;  %v1054_v29 = vand.u32 2147483648, %v997_v12  ;;  %v1052_v34 = vand.u32 2147483647, %v997_v12  ;;  %vm2540_vm3 = vmor %vm1018_vm8, %vm1019_vm11 }
 0x2bf   : > { %v1015_v40 = vsub.f32 1.0, %v1014_v9  ;;  %vm1048_vm1 = vweird.f32 %v997_v12 }
 0x2c0   : > { %v1002_v39 = vadd.f32 %v1697_v4, %v1001_v42  ;;  %v1055_v51 = vor.u32 1.1754944e-38, %v1054_v29  ;;  %vm1053_vm6 = vcmp.eq.f32.partialorder %v1052_v34, 8.507059e+37 }
 0x2c1   : > { %v1703_v14 = vpop.eup %1702  ;;  %v1016_v31 = vmul.f32 %v2509_v8, %v1015_v40 }
 0x2c2   : > { %v1029_v32 = vmul.f32 %v1703_v14, %v996_v1  ;;  %vm1034_vm9 = vweird.f32 %v1703_v14  ;;  %v1006_v56 = vsel %vm2527_vm10, %v1697_v4, %v1002_v39 }
 0x2c3   : > { %v1017_v19 = vadd.f32 %v2509_v8, %v1016_v31  ;;  %vm1035_vm13 = vmor %vm1033_vm12, %vm1034_vm9  ;;  %v1011_v25 = vsel %vm1008_vm2, %v1010_v28, %v1006_v56 }
 0x2c4   : > { %v1705_v30 = vpop.eup %1704  ;;  %v1030_v16 = vsub.f32 1.0, %v1029_v32  ;;  %v1058_v53 = vmul.f32 %v1011_v25, %v2487_v15  ;;  %v1063_v15 = vld [vmem:[%s2756_s7 + $0x8] sm:$0xff] }
 0x2c5   : > { %v1044_v7 = vmul.f32 %v1705_v30, %v997_v12  ;;  %vm1049_vm14 = vweird.f32 %v1705_v30  ;;  %v1021_v52 = vsel %vm2540_vm3, %v2509_v8, %v1017_v19 }
 0x2c6   : > { %v1031_v17 = vmul.f32 %v1703_v14, %v1030_v16  ;;  %vm1050_vm4 = vmor %vm1048_vm1, %vm1049_vm14  ;;  %v1026_v46 = vsel %vm1023_vm7, %v1025_v18, %v1021_v52 }
 0x2c7   : > { %v1045_v10 = vsub.f32 1.0, %v1044_v7 }
 0x2c8   : > { %v1032_v2 = vadd.f32 %v1703_v14, %v1031_v17 }
 0x2c9   : > { %v1046_v33 = vmul.f32 %v1705_v30, %v1045_v10 }
 0x2ca   : > { %v1036_v37 = vsel %vm1035_vm13, %v1703_v14, %v1032_v2 }
 0x2cb   : > { %v1041_v11 = vsel %vm1038_vm15, %v1040_v41, %v1036_v37  ;;  %v1047_v43 = vadd.f32 %v1705_v30, %v1046_v33 }
 0x2cc   : > { %v1060_v44 = vmul.f32 %v1041_v11, %v2493_v58  ;;  %v1059_v58 = vmul.f32 %v1026_v46, %v2490_v54 }
 0x2cd   : > { %v1051_v22 = vsel %vm1050_vm4, %v1705_v30, %v1047_v43 }
 0x2ce   : > { %1096 = vmatpush.msrb.mxu2 %v1060_v44  ;;  %v1056_v24 = vsel %vm1053_vm6, %v1055_v51, %v1051_v22 }
 0x2cf   : > { %v1061_v60 = vmul.f32 %v1056_v24, %v2498_v63 }
 0x2d0   : > { %1097 = vmatpush.msrb.mxu2 %v1058_v53 }
 0x2d1   : > { %1119 = vmatpush.msrb.mxu3 %v1061_v60  ;;  %1606 = vmatmul.msk.f32.vlgmr.msrb.gmra.mxu2 %vm929_vm5, %v1062_v57 }
 0x2d3   : > { %1120 = vmatpush.msrb.mxu3 %v1059_v58 }
 0x2d4   : > { %1608 = vmatmul.msk.f32.vlgmr.msrb.gmra.mxu3 %vm929_vm5, %v1062_v57 }
 0x2d9   : > { %1607 = vmatmul.msk.f32.gmra.mxu2 %vm929_vm5, %v1063_v15 }
 0x2dc   : > { %1609 = vmatmul.msk.f32.gmra.mxu3 %vm929_vm5, %v1063_v15 }
 0x354   : > { %v1099_v62 = vpop.f32.mrf.mxu2 }
 0x355   : > { %v2564_v5 = vadd.f32 %v1099_v62, %v1069_v0 }
 0x357   : > { %v1610_v63 = vmul.f32 -1.442695, %v2564_v5  ;;  %v1122_v54 = vpop.f32.mrf.mxu3 }
 0x358   : > { %v2567_v59 = vadd.f32 %v1122_v54, %v1069_v0  ;;  %v1208_v54 = vld [vmem:[%s2758_s9] sm:$0xff] }
 0x359   : > { %1706 = vpow2.f32 %v1610_v63 }
 0x35a   : > { %v1611_v36 = vmul.f32 -1.442695, %v2567_v59 }
 0x35c   : > { %1708 = vpow2.f32 %v1611_v36  ;;  %v1102_v61 = vpop.f32.mrf.mxu2  ;;  %v1215_v36 = vld [vmem:[%s2758_s9 + $0x38] sm:$0xff] }
 0x35d   : > { %v2570_v38 = vadd.f32 %v1102_v61, %v1074_v55  ;;  %v1216_v61 = vld [vmem:[%s2758_s9 + $0x40] sm:$0xff] }
 0x35f   : > { %v1707_v4 = vpop.eup %1706  ;;  %v1612_v1 = vmul.f32 -1.442695, %v2570_v38  ;;  %v1125_v13 = vpop.f32.mrf.mxu3 }
 0x360   : > { %v1140_v6 = vadd.f32 1.0, %v1707_v4  ;;  %v2573_v8 = vadd.f32 %v1125_v13, %v1074_v55  ;;  %v1211_v4 = vld [vmem:[%s2758_s9 + $0x18] sm:$0xff]  ;;  %v1212_v13 = vld [vmem:[%s2758_s9 + $0x20] sm:$0xff] }
 0x361   : > { %1710 = vpow2.f32 %v1612_v1  ;;  %v1218_v1 = vld [vmem:[%s2758_s9 + $0x50] sm:$0xff] }
 0x362   : > { %v1709_v12 = vpop.eup %1708  ;;  %1712 = vrcp.f32 %v1140_v6  ;;  %v1613_v49 = vmul.f32 -1.442695, %v2573_v8  ;;  %v1155_v27 = vand.u32 2147483648, %v1140_v6  ;;  %vm1149_vm8 = vweird.f32 %v1140_v6 }
 0x363   : > { %v2576_v45 = vadd.f32 1.0, %v1709_v12  ;;  %v1153_v10 = vand.u32 2147483647, %v1140_v6  ;;  %v1220_v12 = vld [vmem:[%s2758_s9 + $0x60] sm:$0xff] }
 0x364   : > { %1714 = vpow2.f32 %v1613_v49  ;;  %v1156_v48 = vor.u32 1.1754944e-38, %v1155_v27  ;;  %v1214_v49 = vld [vmem:[%s2758_s9 + $0x30] sm:$0xff] }
 0x365   : > { %1716 = vrcp.f32 %v2576_v45  ;;  %vm1164_vm10 = vweird.f32 %v2576_v45  ;;  %v1168_v56 = vand.u32 2147483647, %v2576_v45  ;;  %v1170_v37 = vand.u32 2147483648, %v2576_v45 }
 0x366   : > { %vm1154_vm4 = vcmp.eq.f32.partialorder %v1153_v10, 8.507059e+37 }
 0x367   : > { %v1711_v9 = vpop.eup %1710  ;;  %v1171_v60 = vor.u32 1.1754944e-38, %v1170_v37 }
 0x368   : > { %v1713_v40 = vpop.eup %1712  ;;  %v1142_v42 = vadd.f32 1.0, %v1711_v9  ;;  %v1222_v9 = vld [vmem:[%s2758_s9 + $0x70] sm:$0xff] }
 0x369   : > { %v1145_v14 = vmul.f32 %v1713_v40, %v1140_v6  ;;  %vm1150_vm9 = vweird.f32 %v1713_v40  ;;  %v1219_v6 = vld [vmem:[%s2758_s9 + $0x58] sm:$0xff] }
 0x36a   : > { %v1715_v47 = vpop.eup %1714  ;;  %1718 = vrcp.f32 %v1142_v42  ;;  %v1185_v21 = vand.u32 2147483648, %v1142_v42  ;;  %v1183_v29 = vand.u32 2147483647, %v1142_v42  ;;  %vm2583_vm12 = vmor %vm1149_vm8, %vm1150_vm9  ;;  %vm1179_vm14 = vweird.f32 %v1142_v42 }
 0x36b   : > { %v1717_v32 = vpop.eup %1716  ;;  %v1143_v26 = vadd.f32 1.0, %v1715_v47  ;;  %v1146_v31 = vsub.f32 1.0, %v1145_v14  ;;  %vm1169_vm9 = vcmp.eq.f32.partialorder %v1168_v56, 8.507059e+37  ;;  %v1248_v14 = vpop.permute.xlu1 %1247 }
 0x36c   : > { %v1160_v30 = vmul.f32 %v1717_v32, %v2576_v45  ;;  %vm1165_vm13 = vweird.f32 %v1717_v32  ;;  %v1186_v43 = vor.u32 1.1754944e-38, %v1185_v21  ;;  %vm1184_vm2 = vcmp.eq.f32.partialorder %v1183_v29, 8.507059e+37  ;;  %v1221_v45 = vld [vmem:[%s2758_s9 + $0x68] sm:$0xff] }
 0x36d   : > { %1720 = vrcp.f32 %v1143_v26  ;;  %v1147_v39 = vmul.f32 %v1713_v40, %v1146_v31  ;;  %v1200_v3 = vand.u32 2147483648, %v1143_v26  ;;  %v1198_v52 = vand.u32 2147483647, %v1143_v26  ;;  %vm2593_vm6 = vmor %vm1164_vm10, %vm1165_vm13 }
 0x36e   : > { %v1161_v16 = vsub.f32 1.0, %v1160_v30  ;;  %vm1194_vm3 = vweird.f32 %v1143_v26 }
 0x36f   : > { %v1148_v23 = vadd.f32 %v1713_v40, %v1147_v39  ;;  %v1201_v57 = vor.u32 1.1754944e-38, %v1200_v3  ;;  %vm1199_vm8 = vcmp.eq.f32.partialorder %v1198_v52, 8.507059e+37 }
 0x370   : > { %v1719_v35 = vpop.eup %1718  ;;  %v1162_v28 = vmul.f32 %v1717_v32, %v1161_v16 }
 0x371   : > { %v1175_v7 = vmul.f32 %v1719_v35, %v1142_v42  ;;  %vm1180_vm11 = vweird.f32 %v1719_v35  ;;  %v1152_v11 = vsel %vm2583_vm12, %v1713_v40, %v1148_v23  ;;  %v1223_v40 = vld [vmem:[%s2758_s9 + $0x78] sm:$0xff]  ;;  %v1243_v42 = vpop.permute.xlu2 %1242 }
 0x372   : > { %v1163_v34 = vadd.f32 %v1717_v32, %v1162_v28  ;;  %vm1181_vm15 = vmor %vm1179_vm14, %vm1180_vm11  ;;  %v1157_v24 = vsel %vm1154_vm4, %v1156_v48, %v1152_v11  ;;  %v1288_v11 = vpop.permute.xlu0 %1287 }
 0x373   : > { %v1721_v17 = vpop.eup %1720  ;;  %v1176_v20 = vsub.f32 1.0, %v1175_v7  ;;  %v1204_v0 = vmul.f32 %v1157_v24, %v2564_v5  ;;  %v1209_v5 = vld [vmem:[%s2758_s9 + $0x8] sm:$0xff] }
 0x374   : > { %v1190_v19 = vmul.f32 %v1721_v17, %v1143_v26  ;;  %vm1195_vm1 = vweird.f32 %v1721_v17  ;;  %v1167_v53 = vsel %vm2593_vm6, %v1717_v32, %v1163_v34  ;;  %v1258_v32 = vpop.permute.xlu1 %1257 }
 0x375   : > { %v1177_v2 = vmul.f32 %v1719_v35, %v1176_v20  ;;  %vm1196_vm7 = vmor %vm1194_vm3, %vm1195_vm1  ;;  %v1172_v62 = vsel %vm1169_vm9, %v1171_v60, %v1167_v53 }
 0x376   : > { %v1191_v41 = vsub.f32 1.0, %v1190_v19  ;;  %v1205_v55 = vmul.f32 %v1172_v62, %v2567_v59  ;;  %v1210_v59 = vld [vmem:[%s2758_s9 + $0x10] sm:$0xff] }
 0x377   : > { %v1178_v50 = vadd.f32 %v1719_v35, %v1177_v2 }
 0x378   : > { %v1192_v25 = vmul.f32 %v1721_v17, %v1191_v41 }
 0x379   : > { %v1182_v44 = vsel %vm1181_vm15, %v1719_v35, %v1178_v50  ;;  %v1253_v47 = vpop.permute.xlu2 %1252 }
 0x37a   : > { %v1187_v18 = vsel %vm1184_vm2, %v1186_v43, %v1182_v44  ;;  %v1193_v22 = vadd.f32 %v1721_v17, %v1192_v25 }
 0x37b   : > { %v1206_v46 = vmul.f32 %v1187_v18, %v2570_v38  ;;  %v1217_v38 = vld [vmem:[%s2758_s9 + $0x48] sm:$0xff] }
 0x37c   : > { %v1197_v58 = vsel %vm1196_vm7, %v1721_v17, %v1193_v22  ;;  %v2683_v31 = vpop.permute.xlu1 %1267 }
 0x37d   : > { %1382 = vmatpush.msrb.mxu0 %v1206_v46  ;;  %1650 = vmatpush.msra.mxu2 %v1206_v46  ;;  %v1202_v15 = vsel %vm1199_vm8, %v1201_v57, %v1197_v58 }
 0x37e   : > { %v1207_v63 = vmul.f32 %v1202_v15, %v2573_v8  ;;  %v1213_v8 = vld [vmem:[%s2758_s9 + $0x28] sm:$0xff] }
 0x37f   : > { %1383 = vmatpush.msrb.mxu0 %v1204_v0  ;;  %1651 = vmatpush.msra.mxu2 %v1204_v0 }
 0x380   : > { %1447 = vmatpush.msrb.mxu1 %v1207_v63  ;;  %1652 = vmatpush.msra.mxu3 %v1207_v63 }
 0x381   : > { %1614 = vmatmul.msk.f32.vlgmr.msrb.gmra.mxu0 %vm929_vm5, %v1208_v54  ;;  %1621 = vmatmul.msk.f32.vlgmr.msra.gmra.mxu2 %vm929_vm5, %v1215_v36  ;;  %v1263_v26 = vpop.permute.xlu2 %1262 }
 0x382   : > { %1448 = vmatpush.msrb.mxu1 %v1205_v55  ;;  %1653 = vmatpush.msra.mxu3 %v1205_v55 }
 0x383   : > { %1630 = vmatmul.msk.f32.vlgmr.msrb.gmra.mxu1 %vm929_vm5, %v1208_v54  ;;  %1637 = vmatmul.msk.f32.vlgmr.msra.gmra.mxu3 %vm929_vm5, %v1215_v36 }
 0x384   : > { %v1278_v7 = vpop.permute.xlu1 %1277 }
 0x389   : > { %1615 = vmatmul.msk.f32.gmra.mxu0 %vm929_vm5, %v1209_v5  ;;  %1622 = vmatmul.msk.f32.gmra.mxu2 %vm929_vm5, %v1216_v61  ;;  %v2693_v27 = vpop.permute.xlu2 %1272 }
 0x38b   : > { %1631 = vmatmul.msk.f32.gmra.mxu1 %vm929_vm5, %v1209_v5  ;;  %1638 = vmatmul.msk.f32.gmra.mxu3 %vm929_vm5, %v1216_v61 }
 0x38c   : > { %v1293_v53 = vpop.permute.xlu1 %1292 }
 0x391   : > { %1616 = vmatmul.msk.f32.gmra.mxu0 %vm929_vm5, %v1210_v59  ;;  %1623 = vmatmul.msk.f32.gmra.mxu2 %vm929_vm5, %v1217_v38  ;;  %v1283_v2 = vpop.permute.xlu2 %1282 }
 0x393   : > { %1632 = vmatmul.msk.f32.gmra.mxu1 %vm929_vm5, %v1210_v59  ;;  %1639 = vmatmul.msk.f32.gmra.mxu3 %vm929_vm5, %v1217_v38 }
 0x399   : > { %1617 = vmatmul.msk.f32.gmra.mxu0 %vm929_vm5, %v1211_v4  ;;  %1624 = vmatmul.msk.f32.gmra.mxu2 %vm929_vm5, %v1218_v1  ;;  %v1298_v54 = vpop.permute.xlu2 %1297 }
 0x39b   : > { %1633 = vmatmul.msk.f32.gmra.mxu1 %vm929_vm5, %v1211_v4  ;;  %1640 = vmatmul.msk.f32.gmra.mxu3 %vm929_vm5, %v1218_v1 }
 0x3a1   : > { %1618 = vmatmul.msk.f32.gmra.mxu0 %vm929_vm5, %v1212_v13  ;;  %1625 = vmatmul.msk.f32.gmra.mxu2 %vm929_vm5, %v1219_v6 }
 0x3a3   : > { %1634 = vmatmul.msk.f32.gmra.mxu1 %vm929_vm5, %v1212_v13  ;;  %1641 = vmatmul.msk.f32.gmra.mxu3 %vm929_vm5, %v1219_v6  ;;  %v1303_v13 = vpop.permute.xlu0 %1302 }
 0x3a9   : > { %1619 = vmatmul.msk.f32.gmra.mxu0 %vm929_vm5, %v1213_v8  ;;  %1626 = vmatmul.msk.f32.gmra.mxu2 %vm929_vm5, %v1220_v12 }
 0x3ab   : > { %1635 = vmatmul.msk.f32.gmra.mxu1 %vm929_vm5, %v1213_v8  ;;  %1642 = vmatmul.msk.f32.gmra.mxu3 %vm929_vm5, %v1220_v12 }
 0x3b1   : > { %1620 = vmatmul.msk.f32.gmra.mxu0 %vm929_vm5, %v1214_v49  ;;  %1627 = vmatmul.msk.f32.gmra.mxu2 %vm929_vm5, %v1221_v45 }
 0x3b3   : > { %1636 = vmatmul.msk.f32.gmra.mxu1 %vm929_vm5, %v1214_v49  ;;  %1643 = vmatmul.msk.f32.gmra.mxu3 %vm929_vm5, %v1221_v45 }
 0x3b9   : > { %1628 = vmatmul.msk.f32.gmra.mxu2 %vm929_vm5, %v1222_v9 }
 0x3bb   : > { %1644 = vmatmul.msk.f32.gmra.mxu3 %vm929_vm5, %v1222_v9 }
 0x3c1   : > { %1629 = vmatmul.msk.f32.gmra.mxu2 %vm929_vm5, %v1223_v40 }
 0x3c3   : > { %1645 = vmatmul.msk.f32.gmra.mxu3 %vm929_vm5, %v1223_v40 }
 0x3fe   : > { %v1385_v30 = vpop.f32.mrf.mxu0 }
 0x3ff   : > { %v1386_v16 = vadd.f32 %v1385_v30, %v1243_v42  ;;  %v1313_v30 = vpop.permute.xlu2 %1312 }
 0x400   : > { %v1450_v39 = vpop.f32.mrf.mxu1 }
 0x401   : > { %1498 = vst [vmem:[%s2690_s25] sm:$0xff] %v1386_v16  ;;  %v1451_v35 = vadd.f32 %v1450_v39, %v1243_v42 }
 0x403   : > { %1499 = vst.msk [vmem:[%s2690_s25 + $0x8] sm:$0xff] %vm419_vm0, %v1451_v35 }
 0x404   : > { %v1406_v28 = vpop.f32.mrf.mxu2 }
 0x405   : > { %v1407_v17 = vadd.f32 %v1406_v28, %v1278_v7 }
 0x406   : > { %v1471_v20 = vpop.f32.mrf.mxu3  ;;  %v1388_v23 = vpop.f32.mrf.mxu0 }
 0x407   : > { %1512 = vst [vmem:[%s2690_s25 + $0x70] sm:$0xff] %v1407_v17  ;;  %v1472_v10 = vadd.f32 %v1471_v20, %v1278_v7  ;;  %v1389_v21 = vadd.f32 %v1388_v23, %v1248_v14  ;;  %v1318_v7 = vpop.permute.xlu0 %1317 }
 0x408   : > { %v1453_v19 = vpop.f32.mrf.mxu1 }
 0x409   : > { %1513 = vst.msk [vmem:[%s2690_s25 + $0x78] sm:$0xff] %vm419_vm0, %v1472_v10  ;;  %v1454_v48 = vadd.f32 %v1453_v19, %v1248_v14  ;;  %v1308_v14 = vpop.permute.xlu1 %1307 }
 0x40a   : > { %1500 = vst [vmem:[%s2690_s25 + $0x10] sm:$0xff] %v1389_v21 }
 0x40b   : > { %1501 = vst.msk [vmem:[%s2690_s25 + $0x18] sm:$0xff] %vm419_vm0, %v1454_v48 }
 0x40c   : > { %v1409_v29 = vpop.f32.mrf.mxu2 }
 0x40d   : > { %v1410_v56 = vadd.f32 %v1409_v29, %v1283_v2 }
 0x40e   : > { %v1474_v41 = vpop.f32.mrf.mxu3  ;;  %v1391_v33 = vpop.f32.mrf.mxu0 }
 0x40f   : > { %1514 = vst [vmem:[%s2690_s25 + $0x80] sm:$0xff] %v1410_v56  ;;  %v1475_v34 = vadd.f32 %v1474_v41, %v1283_v2  ;;  %v1392_v37 = vadd.f32 %v1391_v33, %v1253_v47 }
 0x410   : > { %v1456_v50 = vpop.f32.mrf.mxu1 }
 0x411   : > { %1515 = vst.msk [vmem:[%s2690_s25 + $0x88] sm:$0xff] %vm419_vm0, %v1475_v34  ;;  %v1457_v3 = vadd.f32 %v1456_v50, %v1253_v47 }
 0x412   : > { %1502 = vst [vmem:[%s2690_s25 + $0x20] sm:$0xff] %v1392_v37 }
 0x413   : > { %1503 = vst.msk [vmem:[%s2690_s25 + $0x28] sm:$0xff] %vm419_vm0, %v1457_v3 }
 0x414   : > { %v1412_v43 = vpop.f32.mrf.mxu2 }
 0x415   : > { %v1413_v25 = vadd.f32 %v1412_v43, %v1288_v11 }
 0x416   : > { %v1477_v52 = vpop.f32.mrf.mxu3  ;;  %v1394_v44 = vpop.f32.mrf.mxu0 }
 0x417   : > { %1516 = vst [vmem:[%s2690_s25 + $0x90] sm:$0xff] %v1413_v25  ;;  %v1478_v51 = vadd.f32 %v1477_v52, %v1288_v11  ;;  %v1395_v18 = vadd.f32 %v1394_v44, %v1258_v32 }
 0x418   : > { %v1459_v22 = vpop.f32.mrf.mxu1 }
 0x419   : > { %1517 = vst.msk [vmem:[%s2690_s25 + $0x98] sm:$0xff] %vm419_vm0, %v1478_v51  ;;  %v1460_v24 = vadd.f32 %v1459_v22, %v1258_v32 }
 0x41a   : > { %1504 = vst [vmem:[%s2690_s25 + $0x30] sm:$0xff] %v1395_v18 }
 0x41b   : > { %1505 = vst.msk [vmem:[%s2690_s25 + $0x38] sm:$0xff] %vm419_vm0, %v1460_v24 }
 0x41c   : > { %v1415_v46 = vpop.f32.mrf.mxu2 }
 0x41d   : > { %v1416_v57 = vadd.f32 %v1415_v46, %v1293_v53 }
 0x41e   : > { %v1480_v60 = vpop.f32.mrf.mxu3  ;;  %v1397_v58 = vpop.f32.mrf.mxu0 }
 0x41f   : > { %1518 = vst [vmem:[%s2690_s25 + $0xa0] sm:$0xff] %v1416_v57  ;;  %v1481_v15 = vadd.f32 %v1480_v60, %v1293_v53  ;;  %v1398_v0 = vadd.f32 %v1397_v58, %v1263_v26 }
 0x420   : > { %v1462_v62 = vpop.f32.mrf.mxu1 }
 0x421   : > { %1519 = vst.msk [vmem:[%s2690_s25 + $0xa8] sm:$0xff] %vm419_vm0, %v1481_v15  ;;  %v1463_v63 = vadd.f32 %v1462_v62, %v1263_v26 }
 0x422   : > { %1506 = vst [vmem:[%s2690_s25 + $0x40] sm:$0xff] %v1398_v0 }
 0x423   : > { %1507 = vst.msk [vmem:[%s2690_s25 + $0x48] sm:$0xff] %vm419_vm0, %v1463_v63 }
 0x424   : > { %v1418_v36 = vpop.f32.mrf.mxu2 }
 0x425   : > { %v1419_v55 = vadd.f32 %v1418_v36, %v1298_v54 }
 0x426   : > { %v1483_v5 = vpop.f32.mrf.mxu3  ;;  %v1400_v61 = vpop.f32.mrf.mxu0 }
 0x427   : > { %1520 = vst [vmem:[%s2690_s25 + $0xb0] sm:$0xff] %v1419_v55  ;;  %v1484_v59 = vadd.f32 %v1483_v5, %v1298_v54  ;;  %v1401_v38 = vadd.f32 %v1400_v61, %v2683_v31 }
 0x428   : > { %v1465_v4 = vpop.f32.mrf.mxu1 }
 0x429   : > { %1521 = vst.msk [vmem:[%s2690_s25 + $0xb8] sm:$0xff] %vm419_vm0, %v1484_v59  ;;  %v1466_v1 = vadd.f32 %v1465_v4, %v2683_v31 }
 0x42a   : > { %1508 = vst [vmem:[%s2690_s25 + $0x50] sm:$0xff] %v1401_v38 }
 0x42b   : > { %1509 = vst.msk [vmem:[%s2690_s25 + $0x58] sm:$0xff] %vm419_vm0, %v1466_v1 }
 0x42c   : > { %v1421_v6 = vpop.f32.mrf.mxu2 }
 0x42d   : > { %v1422_v8 = vadd.f32 %v1421_v6, %v1303_v13 }
 0x42e   : > { %v1486_v12 = vpop.f32.mrf.mxu3  ;;  %v1403_v49 = vpop.f32.mrf.mxu0 }
 0x42f   : > { %1522 = vst [vmem:[%s2690_s25 + $0xc0] sm:$0xff] %v1422_v8  ;;  %v1487_v45 = vadd.f32 %v1486_v12, %v1303_v13  ;;  %v1404_v9 = vadd.f32 %v1403_v49, %v2693_v27 }
 0x430   : > { %v1468_v40 = vpop.f32.mrf.mxu1 }
 0x431   : > { %1523 = vst.msk [vmem:[%s2690_s25 + $0xc8] sm:$0xff] %vm419_vm0, %v1487_v45  ;;  %v1469_v42 = vadd.f32 %v1468_v40, %v2693_v27 }
 0x432   : > { %1510 = vst [vmem:[%s2690_s25 + $0x60] sm:$0xff] %v1404_v9 }
 0x433   : > { %1511 = vst.msk [vmem:[%s2690_s25 + $0x68] sm:$0xff] %vm419_vm0, %v1469_v42 }
 0x434   : > { %v1424_v47 = vpop.f32.mrf.mxu2 }
 0x435   : > { %v1425_v32 = vadd.f32 %v1424_v47, %v1308_v14 }
 0x436   : > { %v1489_v26 = vpop.f32.mrf.mxu3 }
 0x437   : > { %1524 = vst [vmem:[%s2690_s25 + $0xd0] sm:$0xff] %v1425_v32  ;;  %v1490_v31 = vadd.f32 %v1489_v26, %v1308_v14 }
 0x439   : > { %1525 = vst.msk [vmem:[%s2690_s25 + $0xd8] sm:$0xff] %vm419_vm0, %v1490_v31 }
 0x43c   : > { %v1427_v16 = vpop.f32.mrf.mxu2 }
 0x43d   : > { %v1428_v39 = vadd.f32 %v1427_v16, %v1313_v30 }
 0x43e   : > { %v1492_v35 = vpop.f32.mrf.mxu3 }
 0x43f   : > { %1526 = vst [vmem:[%s2690_s25 + $0xe0] sm:$0xff] %v1428_v39  ;;  %v1493_v27 = vadd.f32 %v1492_v35, %v1313_v30 }
 0x441   : > { %1527 = vst.msk [vmem:[%s2690_s25 + $0xe8] sm:$0xff] %vm419_vm0, %v1493_v27 }
 0x444   : > { %v1430_v28 = vpop.f32.mrf.mxu2 }
 0x445   : > { %v1431_v17 = vadd.f32 %v1430_v28, %v1318_v7 }
 0x446   : > { %v1495_v20 = vpop.f32.mrf.mxu3 }
 0x447   : > { %1528 = vst [vmem:[%s2690_s25 + $0xf0] sm:$0xff] %v1431_v17  ;;  %v1496_v23 = vadd.f32 %v1495_v20, %v1318_v7 }
 0x449   : > { %1529 = vst.msk [vmem:[%s2690_s25 + $0xf8] sm:$0xff] %vm419_vm0, %v1496_v23 }
 0x44a PF: > { %s21_s17 = sadd.s32 1, %s1728_s17  }
 0x44b   : > { %p18_p4 = scmp.ge.s32.totalorder %s21_s17, 4  }
 0x44d   :  { %20 = sbr.rel (!%p18_p4) target bundleno = 1 (0x1), region = 94 }

</bundles_post_ra>
